<compile_context>
chip_gen: v7x
topology: tpu7x:2x2x1
jax: 0.10.0
libtpu: 0.0.40
codegen_flags: <defaults>
</compile_context>

<pallas_src>
import jax
import jax.numpy as jnp
from jax.experimental import pallas as pl
from jax.experimental.pallas import tpu as pltpu

EPS = 1e-5  # PyTorch LayerNorm default eps


def _dane_kernel(src_ref, tgt_ref, gw_ref, w1_ref, g_c_ref, b_c_ref, w2_ref,
                 c0_ref, out_ref, ch_acc_ref):
    """One grid step = tb batch entries x one N0 chunk, all h heads folded in."""
    ni = pl.program_id(1)
    n_chunks = pl.num_programs(1)

    tb, n0b, h, S, D = src_ref.shape

    src = src_ref[...].astype(jnp.float32)      # (tb, n0b, h, S, D)
    tgt = tgt_ref[...].astype(jnp.float32)      # (tb, n0b, h, S, D)

    # ---------- channel branch: accumulate sum over (N0, S) across chunks ----
    @pl.when(ni == 0)
    def _():
        ch_acc_ref[...] = jnp.zeros_like(ch_acc_ref)

    ch_acc_ref[...] += jnp.sum(tgt, axis=(1, 3))                  # (tb, h, D)

    # ---------- spatial branch (fused LayerNorm + Linear(D->1)) --------------
    #   sum_d(LN(x)_d * w_d) = rsqrt(var+eps) * sum_d((x_d - mu) * (gamma*w)_d)
    #                          + sum_d(beta_d * w_d)
    gw = gw_ref[...]                                              # (1, D)
    mu = jnp.mean(src, axis=-1, keepdims=True)                    # (tb,n0b,h,S,1)
    cen = src - mu
    var = jnp.mean(cen * cen, axis=-1, keepdims=True)             # two-pass var
    dotc = jnp.sum(cen * gw, axis=-1, keepdims=True)
    row = jax.lax.rsqrt(var + EPS) * dotc                         # (tb,n0b,h,S,1)
    spatial = jnp.mean(row, axis=3)                               # (tb,n0b,h,1)

    # Stash pre-activation spatial values into the resident output block.
    off = pl.multiple_of(ni * n0b, n0b)
    out_ref[:, pl.ds(off, n0b), :, :] = jnp.broadcast_to(spatial, (tb, n0b, h, D))

    # ---------- finalize on the last N0 chunk --------------------------------
    @pl.when(ni == n_chunks - 1)
    def _():
        N0 = out_ref.shape[1]
        ch = ch_acc_ref[...] * (1.0 / float(N0 * S))              # (tb, h, D)

        # Linear(D -> D/r, no bias); w1 in torch layout (Dr, D).  The pooled
        # tensor is tiny, so plain broadcast-multiply-reduce is used.
        w1 = w1_ref[...]
        h1 = jnp.sum(ch[:, :, None, :] * w1[None, None, :, :], axis=-1)  # (tb,h,Dr)
        h1 = h1 * jax.nn.sigmoid(h1)                              # SiLU

        mu2 = jnp.mean(h1, axis=-1, keepdims=True)                # LayerNorm(D/r)
        c2 = h1 - mu2
        var2 = jnp.mean(c2 * c2, axis=-1, keepdims=True)
        h1n = c2 * jax.lax.rsqrt(var2 + EPS) * g_c_ref[...] + b_c_ref[...]

        # Linear(D/r -> D, no bias); w2 in torch layout (D, Dr).
        w2 = w2_ref[...]
        chm = jnp.sum(h1n[:, :, None, :] * w2[None, None, :, :], axis=-1)  # (tb,h,D)
        chm = chm + c0_ref[0]                                     # + sum(beta*w_sp)

        out_ref[...] = jax.nn.sigmoid(out_ref[...] + chm[:, None, :, :])


def _largest_divisor_leq(n, cap):
    cap = max(1, min(n, cap))
    for d in range(cap, 0, -1):
        if n % d == 0:
            return d
    return 1


def _tile_plan(B, N0, h, S, D, itemsize):
    """Generation-aware block / VMEM budgeting."""
    kind = ""
    try:
        kind = jax.devices()[0].device_kind.lower()
    except Exception:
        pass
    if "v5" in kind or "v6" in kind:          # 128 MiB VMEM parts
        max_block_bytes, vmem_limit = 8 << 20, 96 << 20
    elif "v7" in kind:                        # 64 MiB VMEM per TensorCore
        max_block_bytes, vmem_limit = 5 << 20, 48 << 20
    else:                                     # unknown: conservative
        max_block_bytes, vmem_limit = 4 << 20, 32 << 20

    slab = N0 * h * S * D * itemsize          # one full batch entry
    if slab <= max_block_bytes:
        # Keep >= 2 grid steps on the parallel axis when B >= 2 (v7x megacore).
        tb_cap = max(1, B // 2) if B >= 2 else 1
        tb_cap = min(tb_cap, max(1, max_block_bytes // slab))
        tb = _largest_divisor_leq(B, tb_cap)
        n0_blk = N0
    else:
        tb = 1
        n0_blk = _largest_divisor_leq(
            N0, max(1, max_block_bytes // (h * S * D * itemsize)))
        blk = n0_blk * h * S * D * itemsize
        if blk > max_block_bytes:
            # TODO(synk): add an S-chunk fallback if even one N0 row exceeds the
            # budget; for now grow the scoped-VMEM request instead of failing
            # silently.
            vmem_limit = max(vmem_limit, 6 * blk)
    return tb, n0_blk, vmem_limit


def dane_forward(source, target, params):
    """source, target: (B, N0, h, S, D) -> (B, N0, h, 1, D) float32."""
    B, N0, h, S, D = source.shape
    assert target.shape == source.shape
    Dr = params["w1"].shape[0]

    # Fused spatial LN + Linear(D->1) constants (tiny, computed in the wrapper).
    gw = (params["ln_s_g"] * params["w_sp"]).astype(jnp.float32)             # (1, D)
    c0 = jnp.sum(params["ln_s_b"] * params["w_sp"]).reshape(1).astype(jnp.float32)

    itemsize = jnp.dtype(source.dtype).itemsize
    tb, n0_blk, vmem_limit = _tile_plan(B, N0, h, S, D, itemsize)
    grid = (B // tb, N0 // n0_blk)

    big_spec = pl.BlockSpec((tb, n0_blk, h, S, D),
                            lambda bi, ni: (bi, ni, 0, 0, 0))

    def full_spec(shape):
        return pl.BlockSpec(shape, lambda bi, ni: (0,) * len(shape))

    out = pl.pallas_call(
        _dane_kernel,
        out_shape=jax.ShapeDtypeStruct((B, N0, h, D), jnp.float32),
        grid=grid,
        in_specs=[
            big_spec,                          # source  (tb, n0_blk, h, S, D)
            big_spec,                          # target  (tb, n0_blk, h, S, D)
            full_spec((1, D)),                 # gw  = ln_spatial_gamma * w_spatial
            full_spec((Dr, D)),                # Linear(D->Dr).weight (torch layout)
            full_spec((1, Dr)),                # channel LN gamma
            full_spec((1, Dr)),                # channel LN beta
            full_spec((D, Dr)),                # Linear(Dr->D).weight (torch layout)
            pl.BlockSpec(memory_space=pltpu.MemorySpace.SMEM),  # c0 scalar
        ],
        out_specs=pl.BlockSpec((tb, N0, h, D), lambda bi, ni: (bi, 0, 0, 0)),
        scratch_shapes=[pltpu.VMEM((tb, h, D), jnp.float32)],   # channel-sum acc
        compiler_params=pltpu.CompilerParams(
            dimension_semantics=("parallel", "arbitrary"),
            vmem_limit_bytes=vmem_limit),
    )(source, target, gw,
      params["w1"], params["ln_c_g"], params["ln_c_b"], params["w2"], c0)

    # (B, N0, h, D) -> (B, N0, h, 1, D): pure expand_dims, no transpose/copy.
    return out[:, :, :, None, :]


def dane_reference(source, target, params):
    """Pure-JAX mirror of the PyTorch forward (for verification)."""
    src = jnp.transpose(source, (0, 2, 1, 3, 4))                   # (B,h,N0,S,D)
    mu = src.mean(-1, keepdims=True)
    var = ((src - mu) ** 2).mean(-1, keepdims=True)
    normed = (src - mu) / jnp.sqrt(var + EPS) * params["ln_s_g"][0] + params["ln_s_b"][0]
    sp = (normed * params["w_sp"][0]).sum(-1).mean(-1)             # (B,h,N0)

    tgt = jnp.transpose(target, (0, 2, 4, 3, 1))                   # (B,h,D,S,N0)
    ch = tgt.mean((-1, -2))                                        # (B,h,D)
    h1 = ch @ params["w1"].T
    h1 = h1 * jax.nn.sigmoid(h1)
    mu2 = h1.mean(-1, keepdims=True)
    var2 = ((h1 - mu2) ** 2).mean(-1, keepdims=True)
    h1n = (h1 - mu2) / jnp.sqrt(var2 + EPS) * params["ln_c_g"][0] + params["ln_c_b"][0]
    chm = h1n @ params["w2"].T                                     # (B,h,D)

    w = jax.nn.sigmoid(sp[..., None] + chm[:, :, None, :])         # (B,h,N0,D)
    return jnp.transpose(w, (0, 2, 1, 3))[:, :, :, None, :]        # (B,N0,h,1,D)


def init_params(key, dim, reduction=8):
    dr = dim // reduction
    k1, k2, k3, k4, k5, k6, k7 = jax.random.split(key, 7)

    def linear_init(k, fan_in, shape):
        bound = 1.0 / jnp.sqrt(fan_in)
        return jax.random.uniform(k, shape, jnp.float32, -bound, bound)

    # LN params perturbed away from 1/0 so all fused paths are genuinely
    # exercised by the correctness check.
    return {
        "ln_s_g": 1.0 + 0.1 * jax.random.normal(k4, (1, dim), jnp.float32),
        "ln_s_b": 0.1 * jax.random.normal(k5, (1, dim), jnp.float32),
        "w_sp":   linear_init(k1, dim, (1, dim)),        # Linear(dim, 1).weight
        "w1":     linear_init(k2, dim, (dr, dim)),       # Linear(dim, dr).weight
        "ln_c_g": 1.0 + 0.1 * jax.random.normal(k6, (1, dr), jnp.float32),
        "ln_c_b": 0.1 * jax.random.normal(k7, (1, dr), jnp.float32),
        "w2":     linear_init(k3, dr, (dim, dr)),        # Linear(dr, dim).weight
    }


if __name__ == "__main__":
    B, N0, h, S, D = 2, 8, 2, 4, 32
    reduction = 8

    key = jax.random.PRNGKey(0)
    k_src, k_tgt, k_par = jax.random.split(key, 3)
    source = jax.random.normal(k_src, (B, N0, h, S, D), jnp.float32)
    target = jax.random.normal(k_tgt, (B, N0, h, S, D), jnp.float32)
    params = init_params(k_par, D, reduction)

    out = jax.block_until_ready(dane_forward(source, target, params))
    ref = jax.block_until_ready(dane_reference(source, target, params))

    assert out.shape == (B, N0, h, 1, D), out.shape
    max_err = float(jnp.max(jnp.abs(out - ref)))
    assert jnp.allclose(out, ref, atol=2e-5, rtol=2e-5), max_err
    print("KERNEL_OK")
</pallas_src>

<mosaic_0001>
module attributes {stable_mosaic.version = 11 : i64} {
  func.func @_dane_kernel(%arg0: i32, %arg1: i32, %arg2: memref<1x8x2x4x32xf32, #tpu.memory_space<vmem>>, %arg3: memref<1x8x2x4x32xf32, #tpu.memory_space<vmem>>, %arg4: memref<1x32xf32, #tpu.memory_space<vmem>>, %arg5: memref<4x32xf32, #tpu.memory_space<vmem>>, %arg6: memref<1x4xf32, #tpu.memory_space<vmem>>, %arg7: memref<1x4xf32, #tpu.memory_space<vmem>>, %arg8: memref<32x4xf32, #tpu.memory_space<vmem>>, %arg9: memref<1xf32, #tpu.memory_space<smem>>, %arg10: memref<1x8x2x32xf32, #tpu.memory_space<vmem>>, %arg11: memref<1x2x32xf32, #tpu.memory_space<vmem>>) attributes {dimension_semantics = [#tpu.dimension_semantics<parallel>, #tpu.dimension_semantics<arbitrary>], iteration_bounds = array<i64: 2, 1>, scalar_prefetch = 0 : i64, scratch_operands = 1 : i64, tpu.core_type = #tpu.core_type<tc>, window_params = [{transform_indices = @transform_0, window_bounds = array<i64: 1, 8, 2, 4, 32>}, {transform_indices = @transform_1, window_bounds = array<i64: 1, 8, 2, 4, 32>}, {pipeline_mode = #tpu.pipeline_mode<synchronous>, transform_indices = @transform_2, window_bounds = array<i64: 1, 32>}, {pipeline_mode = #tpu.pipeline_mode<synchronous>, transform_indices = @transform_3, window_bounds = array<i64: 4, 32>}, {pipeline_mode = #tpu.pipeline_mode<synchronous>, transform_indices = @transform_4, window_bounds = array<i64: 1, 4>}, {pipeline_mode = #tpu.pipeline_mode<synchronous>, transform_indices = @transform_5, window_bounds = array<i64: 1, 4>}, {pipeline_mode = #tpu.pipeline_mode<synchronous>, transform_indices = @transform_6, window_bounds = array<i64: 32, 4>}, {transform_indices = @transform_7, window_bounds = array<i64: 1>}, {transform_indices = @transform_8, window_bounds = array<i64: 1, 8, 2, 32>}]} {
    %c0 = arith.constant 0 : index
    %c0_0 = arith.constant 0 : index
    %c0_1 = arith.constant 0 : index
    %c0_2 = arith.constant 0 : index
    %c0_3 = arith.constant 0 : index
    %0 = vector.load %arg2[%c0, %c0_0, %c0_1, %c0_2, %c0_3] : memref<1x8x2x4x32xf32, #tpu.memory_space<vmem>>, vector<1x8x2x4x32xf32>
    %c0_4 = arith.constant 0 : index
    %c0_5 = arith.constant 0 : index
    %c0_6 = arith.constant 0 : index
    %c0_7 = arith.constant 0 : index
    %c0_8 = arith.constant 0 : index
    %1 = vector.load %arg3[%c0_4, %c0_5, %c0_6, %c0_7, %c0_8] : memref<1x8x2x4x32xf32, #tpu.memory_space<vmem>>, vector<1x8x2x4x32xf32>
    %c0_i32 = arith.constant 0 : i32
    %2 = arith.cmpi eq, %arg1, %c0_i32 : i32
    %3 = arith.extui %2 : i1 to i32
    %c0_i32_9 = arith.constant 0 : i32
    %4 = arith.cmpi ne, %3, %c0_i32_9 : i32
    scf.if %4 {
      %cst_31 = arith.constant 0.000000e+00 : f32
      %42 = vector.broadcast %cst_31 : f32 to vector<1x2x32xf32>
      %c0_32 = arith.constant 0 : index
      %c0_33 = arith.constant 0 : index
      %c0_34 = arith.constant 0 : index
      %43 = vector.load %arg11[%c0_32, %c0_33, %c0_34] : memref<1x2x32xf32, #tpu.memory_space<vmem>>, vector<1x2x32xf32>
      tpu.vector_store %arg11[%c0_32, %c0_33, %c0_34], %42 {strides = array<i32>} : memref<1x2x32xf32, #tpu.memory_space<vmem>>, vector<1x2x32xf32>,
    } else {
    }
    %c0_10 = arith.constant 0 : index
    %c0_11 = arith.constant 0 : index
    %c0_12 = arith.constant 0 : index
    %5 = vector.load %arg11[%c0_10, %c0_11, %c0_12] : memref<1x2x32xf32, #tpu.memory_space<vmem>>, vector<1x2x32xf32>
    %cst = arith.constant dense<0.000000e+00> : vector<1x2x32xf32>
    %6 = vector.multi_reduction <add>, %1, %cst [1, 3] : vector<1x8x2x4x32xf32> to vector<1x2x32xf32>
    %7 = arith.addf %5, %6 : vector<1x2x32xf32>
    %c0_13 = arith.constant 0 : index
    %c0_14 = arith.constant 0 : index
    %c0_15 = arith.constant 0 : index
    %8 = vector.load %arg11[%c0_13, %c0_14, %c0_15] : memref<1x2x32xf32, #tpu.memory_space<vmem>>, vector<1x2x32xf32>
    tpu.vector_store %arg11[%c0_13, %c0_14, %c0_15], %7 {strides = array<i32>} : memref<1x2x32xf32, #tpu.memory_space<vmem>>, vector<1x2x32xf32>,
    %c0_16 = arith.constant 0 : index
    %c0_17 = arith.constant 0 : index
    %9 = vector.load %arg4[%c0_16, %c0_17] : memref<1x32xf32, #tpu.memory_space<vmem>>, vector<1x32xf32>
    %cst_18 = arith.constant dense<0.000000e+00> : vector<1x8x2x4xf32>
    %10 = vector.multi_reduction <add>, %0, %cst_18 [4] : vector<1x8x2x4x32xf32> to vector<1x8x2x4xf32>
    %11 = vector.shape_cast %10 : vector<1x8x2x4xf32> to vector<1x8x2x4x1xf32>
    %cst_19 = arith.constant 3.200000e+01 : f32
    %12 = vector.broadcast %cst_19 : f32 to vector<1x8x2x4x1xf32>
    %13 = arith.divf %11, %12 : vector<1x8x2x4x1xf32>
    %14 = vector.broadcast %13 : vector<1x8x2x4x1xf32> to vector<1x8x2x4x32xf32>
    %15 = arith.subf %0, %14 : vector<1x8x2x4x32xf32>
    %16 = arith.mulf %15, %15 : vector<1x8x2x4x32xf32>
    %cst_20 = arith.constant dense<0.000000e+00> : vector<1x8x2x4xf32>
    %17 = vector.multi_reduction <add>, %16, %cst_20 [4] : vector<1x8x2x4x32xf32> to vector<1x8x2x4xf32>
    %18 = vector.shape_cast %17 : vector<1x8x2x4xf32> to vector<1x8x2x4x1xf32>
    %cst_21 = arith.constant 3.200000e+01 : f32
    %19 = vector.broadcast %cst_21 : f32 to vector<1x8x2x4x1xf32>
    %20 = arith.divf %18, %19 : vector<1x8x2x4x1xf32>
    %21 = vector.shape_cast %9 : vector<1x32xf32> to vector<1x1x1x1x32xf32>
    %22 = vector.broadcast %21 : vector<1x1x1x1x32xf32> to vector<1x8x2x4x32xf32>
    %23 = arith.mulf %15, %22 : vector<1x8x2x4x32xf32>
    %cst_22 = arith.constant dense<0.000000e+00> : vector<1x8x2x4xf32>
    %24 = vector.multi_reduction <add>, %23, %cst_22 [4] : vector<1x8x2x4x32xf32> to vector<1x8x2x4xf32>
    %25 = vector.shape_cast %24 : vector<1x8x2x4xf32> to vector<1x8x2x4x1xf32>
    %cst_23 = arith.constant 9.99999974E-6 : f32
    %26 = vector.broadcast %cst_23 : f32 to vector<1x8x2x4x1xf32>
    %27 = arith.addf %20, %26 : vector<1x8x2x4x1xf32>
    %28 = math.rsqrt %27 : vector<1x8x2x4x1xf32>
    %29 = arith.mulf %28, %25 : vector<1x8x2x4x1xf32>
    %cst_24 = arith.constant dense<0.000000e+00> : vector<1x8x2x1xf32>
    %30 = vector.multi_reduction <add>, %29, %cst_24 [3] : vector<1x8x2x4x1xf32> to vector<1x8x2x1xf32>
    %cst_25 = arith.constant 4.000000e+00 : f32
    %31 = vector.broadcast %cst_25 : f32 to vector<1x8x2x1xf32>
    %32 = arith.divf %30, %31 : vector<1x8x2x1xf32>
    %c8_i32 = arith.constant 8 : i32
    %33 = arith.muli %arg1, %c8_i32 : i32
    %34 = tpu.assume_multiple %33, 8 : i32
    %35 = vector.shape_cast %32 : vector<1x8x2x1xf32> to vector<1x8x2x1xf32>
    %36 = vector.broadcast %35 : vector<1x8x2x1xf32> to vector<1x8x2x32xf32>
    %c0_26 = arith.constant 0 : index
    %37 = arith.index_cast %34 : i32 to index
    %c0_27 = arith.constant 0 : index
    %c0_28 = arith.constant 0 : index
    %38 = vector.load %arg10[%c0_26, %37, %c0_27, %c0_28] : memref<1x8x2x32xf32, #tpu.memory_space<vmem>>, vector<1x8x2x32xf32>
    tpu.vector_store %arg10[%c0_26, %37, %c0_27, %c0_28], %36 {strides = array<i32>} : memref<1x8x2x32xf32, #tpu.memory_space<vmem>>, vector<1x8x2x32xf32>,
    %c0_i32_29 = arith.constant 0 : i32
    %39 = arith.cmpi eq, %arg1, %c0_i32_29 : i32
    %40 = arith.extui %39 : i1 to i32
    %c0_i32_30 = arith.constant 0 : i32
    %41 = arith.cmpi ne, %40, %c0_i32_30 : i32
    scf.if %41 {
      %c0_31 = arith.constant 0 : index
      %c0_32 = arith.constant 0 : index
      %c0_33 = arith.constant 0 : index
      %42 = vector.load %arg11[%c0_31, %c0_32, %c0_33] : memref<1x2x32xf32, #tpu.memory_space<vmem>>, vector<1x2x32xf32>
      %cst_34 = arith.constant 3.125000e-02 : f32
      %43 = vector.broadcast %cst_34 : f32 to vector<1x2x32xf32>
      %44 = arith.mulf %42, %43 : vector<1x2x32xf32>
      %c0_35 = arith.constant 0 : index
      %c0_36 = arith.constant 0 : index
      %45 = vector.load %arg5[%c0_35, %c0_36] : memref<4x32xf32, #tpu.memory_space<vmem>>, vector<4x32xf32>
      %46 = vector.shape_cast %44 : vector<1x2x32xf32> to vector<1x2x1x32xf32>
      %47 = vector.shape_cast %45 : vector<4x32xf32> to vector<1x1x4x32xf32>
      %48 = vector.broadcast %46 : vector<1x2x1x32xf32> to vector<1x2x4x32xf32>
      %49 = vector.broadcast %47 : vector<1x1x4x32xf32> to vector<1x2x4x32xf32>
      %50 = arith.mulf %48, %49 : vector<1x2x4x32xf32>
      %cst_37 = arith.constant dense<0.000000e+00> : vector<1x2x4xf32>
      %51 = vector.multi_reduction <add>, %50, %cst_37 [3] : vector<1x2x4x32xf32> to vector<1x2x4xf32>
      %52 = arith.negf %51 : vector<1x2x4xf32>
      %53 = math.exp %52 : vector<1x2x4xf32>
      %cst_38 = arith.constant 1.000000e+00 : f32
      %54 = vector.broadcast %cst_38 : f32 to vector<1x2x4xf32>
      %55 = arith.addf %54, %53 : vector<1x2x4xf32>
      %56 = arith.divf %54, %55 : vector<1x2x4xf32>
      %57 = arith.mulf %51, %56 : vector<1x2x4xf32>
      %cst_39 = arith.constant dense<0.000000e+00> : vector<1x2xf32>
      %58 = vector.multi_reduction <add>, %57, %cst_39 [2] : vector<1x2x4xf32> to vector<1x2xf32>
      %59 = vector.shape_cast %58 : vector<1x2xf32> to vector<1x2x1xf32>
      %cst_40 = arith.constant 4.000000e+00 : f32
      %60 = vector.broadcast %cst_40 : f32 to vector<1x2x1xf32>
      %61 = arith.divf %59, %60 : vector<1x2x1xf32>
      %62 = vector.broadcast %61 : vector<1x2x1xf32> to vector<1x2x4xf32>
      %63 = arith.subf %57, %62 : vector<1x2x4xf32>
      %64 = arith.mulf %63, %63 : vector<1x2x4xf32>
      %cst_41 = arith.constant dense<0.000000e+00> : vector<1x2xf32>
      %65 = vector.multi_reduction <add>, %64, %cst_41 [2] : vector<1x2x4xf32> to vector<1x2xf32>
      %66 = vector.shape_cast %65 : vector<1x2xf32> to vector<1x2x1xf32>
      %cst_42 = arith.constant 4.000000e+00 : f32
      %67 = vector.broadcast %cst_42 : f32 to vector<1x2x1xf32>
      %68 = arith.divf %66, %67 : vector<1x2x1xf32>
      %cst_43 = arith.constant 9.99999974E-6 : f32
      %69 = vector.broadcast %cst_43 : f32 to vector<1x2x1xf32>
      %70 = arith.addf %68, %69 : vector<1x2x1xf32>
      %71 = math.rsqrt %70 : vector<1x2x1xf32>
      %72 = vector.broadcast %71 : vector<1x2x1xf32> to vector<1x2x4xf32>
      %73 = arith.mulf %63, %72 : vector<1x2x4xf32>
      %c0_44 = arith.constant 0 : index
      %c0_45 = arith.constant 0 : index
      %74 = vector.load %arg6[%c0_44, %c0_45] : memref<1x4xf32, #tpu.memory_space<vmem>>, vector<1x4xf32>
      %75 = vector.shape_cast %74 : vector<1x4xf32> to vector<1x1x4xf32>
      %76 = vector.broadcast %75 : vector<1x1x4xf32> to vector<1x2x4xf32>
      %77 = arith.mulf %73, %76 : vector<1x2x4xf32>
      %c0_46 = arith.constant 0 : index
      %c0_47 = arith.constant 0 : index
      %78 = vector.load %arg7[%c0_46, %c0_47] : memref<1x4xf32, #tpu.memory_space<vmem>>, vector<1x4xf32>
      %79 = vector.shape_cast %78 : vector<1x4xf32> to vector<1x1x4xf32>
      %80 = vector.broadcast %79 : vector<1x1x4xf32> to vector<1x2x4xf32>
      %81 = arith.addf %77, %80 : vector<1x2x4xf32>
      %c0_48 = arith.constant 0 : index
      %c0_49 = arith.constant 0 : index
      %82 = vector.load %arg8[%c0_48, %c0_49] : memref<32x4xf32, #tpu.memory_space<vmem>>, vector<32x4xf32>
      %83 = vector.shape_cast %81 : vector<1x2x4xf32> to vector<1x2x1x4xf32>
      %84 = vector.shape_cast %82 : vector<32x4xf32> to vector<1x1x32x4xf32>
      %85 = vector.broadcast %83 : vector<1x2x1x4xf32> to vector<1x2x32x4xf32>
      %86 = vector.broadcast %84 : vector<1x1x32x4xf32> to vector<1x2x32x4xf32>
      %87 = arith.mulf %85, %86 : vector<1x2x32x4xf32>
      %cst_50 = arith.constant dense<0.000000e+00> : vector<1x2x32xf32>
      %88 = vector.multi_reduction <add>, %87, %cst_50 [3] : vector<1x2x32x4xf32> to vector<1x2x32xf32>
      %c0_51 = arith.constant 0 : index
      %89 = memref.load %arg9[%c0_51] : memref<1xf32, #tpu.memory_space<smem>>
      %90 = vector.broadcast %89 : f32 to vector<1x2x32xf32>
      %91 = arith.addf %88, %90 : vector<1x2x32xf32>
      %c0_52 = arith.constant 0 : index
      %c0_53 = arith.constant 0 : index
      %c0_54 = arith.constant 0 : index
      %c0_55 = arith.constant 0 : index
      %92 = vector.load %arg10[%c0_52, %c0_53, %c0_54, %c0_55] : memref<1x8x2x32xf32, #tpu.memory_space<vmem>>, vector<1x8x2x32xf32>
      %93 = vector.shape_cast %91 : vector<1x2x32xf32> to vector<1x1x2x32xf32>
      %94 = vector.broadcast %93 : vector<1x1x2x32xf32> to vector<1x8x2x32xf32>
      %95 = arith.addf %92, %94 : vector<1x8x2x32xf32>
      %96 = arith.negf %95 : vector<1x8x2x32xf32>
      %97 = math.exp %96 : vector<1x8x2x32xf32>
      %cst_56 = arith.constant 1.000000e+00 : f32
      %98 = vector.broadcast %cst_56 : f32 to vector<1x8x2x32xf32>
      %99 = arith.addf %98, %97 : vector<1x8x2x32xf32>
      %100 = arith.divf %98, %99 : vector<1x8x2x32xf32>
      %c0_57 = arith.constant 0 : index
      %c0_58 = arith.constant 0 : index
      %c0_59 = arith.constant 0 : index
      %c0_60 = arith.constant 0 : index
      %101 = vector.load %arg10[%c0_57, %c0_58, %c0_59, %c0_60] : memref<1x8x2x32xf32, #tpu.memory_space<vmem>>, vector<1x8x2x32xf32>
      tpu.vector_store %arg10[%c0_57, %c0_58, %c0_59, %c0_60], %100 {strides = array<i32>} : memref<1x8x2x32xf32, #tpu.memory_space<vmem>>, vector<1x8x2x32xf32>,
    } else {
    }
    return
  }
  func.func @transform_0(%arg0: i32, %arg1: i32) -> (i32, i32, i32, i32, i32) {
    %c0_i32 = arith.constant 0 : i32
    %c0_i32_0 = arith.constant 0 : i32
    %c0_i32_1 = arith.constant 0 : i32
    %c0_i32_2 = arith.constant 0 : i32
    return %arg0, %arg1, %c0_i32, %c0_i32_0, %c0_i32_1 : i32, i32, i32, i32, i32
  }
  func.func @transform_1(%arg0: i32, %arg1: i32) -> (i32, i32, i32, i32, i32) {
    %c0_i32 = arith.constant 0 : i32
    %c0_i32_0 = arith.constant 0 : i32
    %c0_i32_1 = arith.constant 0 : i32
    %c0_i32_2 = arith.constant 0 : i32
    return %arg0, %arg1, %c0_i32, %c0_i32_0, %c0_i32_1 : i32, i32, i32, i32, i32
  }
  func.func @transform_2(%arg0: i32, %arg1: i32) -> (i32, i32) {
    %c0_i32 = arith.constant 0 : i32
    %c0_i32_0 = arith.constant 0 : i32
    %c0_i32_1 = arith.constant 0 : i32
    return %c0_i32, %c0_i32_0 : i32, i32
  }
  func.func @transform_3(%arg0: i32, %arg1: i32) -> (i32, i32) {
    %c0_i32 = arith.constant 0 : i32
    %c0_i32_0 = arith.constant 0 : i32
    %c0_i32_1 = arith.constant 0 : i32
    return %c0_i32, %c0_i32_0 : i32, i32
  }
  func.func @transform_4(%arg0: i32, %arg1: i32) -> (i32, i32) {
    %c0_i32 = arith.constant 0 : i32
    %c0_i32_0 = arith.constant 0 : i32
    %c0_i32_1 = arith.constant 0 : i32
    return %c0_i32, %c0_i32_0 : i32, i32
  }
  func.func @transform_5(%arg0: i32, %arg1: i32) -> (i32, i32) {
    %c0_i32 = arith.constant 0 : i32
    %c0_i32_0 = arith.constant 0 : i32
    %c0_i32_1 = arith.constant 0 : i32
    return %c0_i32, %c0_i32_0 : i32, i32
  }
  func.func @transform_6(%arg0: i32, %arg1: i32) -> (i32, i32) {
    %c0_i32 = arith.constant 0 : i32
    %c0_i32_0 = arith.constant 0 : i32
    %c0_i32_1 = arith.constant 0 : i32
    return %c0_i32, %c0_i32_0 : i32, i32
  }
  func.func @transform_7(%arg0: i32, %arg1: i32) -> i32 {
    %c0_i32 = arith.constant 0 : i32
    %c0_i32_0 = arith.constant 0 : i32
    return %c0_i32 : i32
  }
  func.func @transform_8(%arg0: i32, %arg1: i32) -> (i32, i32, i32, i32) {
    %c0_i32 = arith.constant 0 : i32
    %c0_i32_0 = arith.constant 0 : i32
    %c0_i32_1 = arith.constant 0 : i32
    %c0_i32_2 = arith.constant 0 : i32
    return %arg0, %c0_i32, %c0_i32_0, %c0_i32_1 : i32, i32, i32, i32
  }
}

</mosaic_0001>

<bundles_post_ra>
// kernel: tpu_custom_call.1
= control target key start
LH: loop header
LB: loop body
LE: loop exit
PB: predicated region body
PF: predicated region fallthrough
CT: control target
= control target key end

     0   :  { %s3733_s0 = inlined_call_operand.hbm [shape: f32[2,8,2,4,32], index: 0, kind: input, shape index: {}]   ;;  %s3734_s1 = inlined_call_operand.hbm [shape: f32[2,8,2,4,32], index: 1, kind: input, shape index: {}]   ;;  %s3735_s2 = inlined_call_operand.vmem [shape: f32[1,32], index: 2, kind: input, shape index: {}]   ;;  %s3736_s3 = inlined_call_operand.vmem [shape: f32[4,32], index: 3, kind: input, shape index: {}]   ;;  %s3737_s4 = inlined_call_operand.vmem [shape: f32[1,4], index: 4, kind: input, shape index: {}]   ;;  %s3738_s5 = inlined_call_operand.vmem [shape: f32[1,4], index: 5, kind: input, shape index: {}]   ;;  %s3739_s6 = inlined_call_operand.vmem [shape: f32[32,4], index: 6, kind: input, shape index: {}]   ;;  %s3740_s7 = inlined_call_operand.<no memory space> [shape: f32[1], index: 7, kind: input, shape index: {}]   ;;  %s3741_s8 = inlined_call_operand.hbm [shape: f32[2,8,2,32], index: 8, kind: output, shape index: {}]  }
   0x1   :  { %3748 = sst [smem:[#allocation15_spill]] %s3733_s0 }
   0x2   :  { %13 = sst [smem:[#allocation3]] %s3740_s7 }
   0x3   :  { %14 = vsyncpa [#allocation5], 0 }
   0x4   :  { %16 = vsyncpa [#allocation5 + $0x1], 0 }
   0x5   :  { %17 = vsyncpa [#allocation8], 0 }
   0x6   :  { %19 = vsyncpa [#allocation8 + $0x1], 0 }
   0x7   :  { %20 = vsyncpa [#allocation6], 0 }
   0x8   :  { %22 = vsyncpa [#allocation6 + $0x1], 0  ;;  %s2676_s29 = smov 0   ;;  %s2678_s30 = smov 0  }
   0x9   :  { %s2680_s9 = smov 0   ;;  %s2682_s10 = smov 0  }
   0xa   :  { %s2684_s11 = smov 0   ;;  %s2686_s12 = smov 0  }
   0xb LB: > { %s2285_s7 = sadd.s32 4294967295, %s2616_s12   ;;  %s2286_s13 = sadd.s32 4294967294, %s2616_s12   ;;  %s2616_s12 = sphi %s2686_s12, %s28_s12   ;;  %s2612_s11 = sphi %s2684_s11, %s3773_s11   ;;  %s2608_s10 = sphi %s2682_s10, %s3772_s10   ;;  %s2604_s9 = sphi %s2680_s9, %s3771_s9   ;;  %s2600_s30 = sphi %s2678_s30, %s3770_s30   ;;  %s2596_s29 = sphi %s2676_s29, %s3769_s29  }
   0xc   : > { %s40_s14 = sadd.s32 1, %s2612_s11  ;;  %s49_s15 = sadd.s32 1, %s2604_s9 }
   0xd   : > { %p42_p0 = scmp.ge.s32.totalorder %s40_s14, 2  ;;  %p56_p1 = scmp.ne.s32.totalorder %s2604_s9, %s2600_s30 }
   0xe   : > { %p57_p2 = scmp.eq.s32.totalorder %s2616_s12, 0  ;;  %p62_p3 = scmp.ne.s32.totalorder %s2600_s30, %s2596_s29 }
   0xf   : > { %s3775_s14 = smov (%p42_p0, %s40_s14), 0  ;;  %p63_p5 = scmp.eq.s32.totalorder %s2285_s7, 0 }
  0x10   : > { %3749 = sst [smem:[#allocation13_spill]] %s3775_s14  ;;  %p2717_p4 = por %p57_p2, %p56_p1 }
  0x11   : > { %s44_s17 = ssub.s32 %s2612_s11, %s3775_s14  ;;  %p240_p6 = scmp.eq.s32.totalorder %s2285_s7, 1 }
  0x12   : > { %p47_p7 = scmp.eq.s32.totalorder %s44_s17, 0  ;;  %p2723_p8 = por %p63_p5, %p62_p3 }
  0x13   : > { %p2727_p9 = por %p240_p6, %p56_p1  ;;  %p246_p10 = scmp.eq.s32.totalorder %s2286_s13, 1 }
  0x14   : > { %s3751_s18 = scalar_select %p2723_p8, 1, 0 }
  0x15   : > { %s3752_s19 = scalar_select %p2727_p9, 1, 0 }
  0x16   : > { %s2732_s20 = scalar_select %p47_p7, %s2604_s9, %s49_s15  }
  0x17   : > { %p2734_p11 = por %p246_p10, %p62_p3  ;;  %p2337_p13 = scmp.lt.s32.totalorder %s2616_s12, 2 }
  0x18   : > { %3753 = sst [smem:[#allocation14_spill]] %s2732_s20  ;;  %s2741_s22 = sand.u32 1, %s2604_s9  }
  0x19   : > { %s3754_s21 = scalar_select %p2734_p11, 1, 0 }
  0x1a   : > { %s3742_s23 = sshll.u32 %s2741_s22, 6  ;;  %s3743_s24 = sshll.u32 %s2612_s11, 10 }
  0x1b   : > { %s3755_s0 = sld [smem:[#allocation15_spill]]  ;;  %s288_s28 = scalar_lea.vmem [#allocation4], %s3742_s23 }
  0x1c   : > { %s298_s7 = sshll.u32 %s288_s28, 4  ;;  %p2758_p0 = pnand %p2337_p13, %p2717_p4  ;;  %s2754_s7 = int_to_ptr.vmem [resolvable:$true] %s298_s7 }
  0x1d   : > { %s285_s15 = scalar_lea.sflag [#allocation5], %s2741_s22 }
  0x1e   : > { %p2472_p3 = pneg %p2758_p0 }
  0x21   : > { %s2750_s27 = scalar_lea.hbm %s3755_s0, %s3743_s24  ;;  %s2475_s16 = scalar_lea.hbm %s3755_s0, 2048 }
  0x22   : > { %s2470_s17 = scalar_lea.hbm %s2750_s27, 1024  ;;  %p2476_p4 = scmp.lt.u32.totalorder %s2750_s27, %s3755_s0 }
  0x23   : > { %p2471_p2 = scmp.ne.s32.totalorder %s2750_s27, %s2470_s17  ;;  %p2477_p7 = scmp.lt.u32.totalorder %s2475_s16, %s2470_s17 }
  0x24   : > { %p2479_p13 = scmp.lt.u32.totalorder %s2470_s17, %s2750_s27 }
  0x25   : > { %p2473_p5 = pnand %p2472_p3, %p2471_p2  ;;  %p2478_p10 = por %p2477_p7, %p2476_p4 }
  0x27   : > { %p2474_p6 = pneg %p2473_p5  ;;  %p2480_p12 = por %p2479_p13, %p2478_p10 }
  0x29   : > { %p2481_p1 = pnand %p2480_p12, %p2474_p6 }
  0x2b   : > { %2484 = shalt.err (!%p2481_p1)
}
  0x2c   : > { %s2485_s24 = scalar_lea.vmem %s2754_s7, 1024  ;;  %s2618_s25 = smov [#allocation4]  }
  0x2d   : > { %p2486_p2 = scmp.ne.s32.totalorder %s2754_s7, %s2485_s24  ;;  %s2490_s26 = sshll.u32 %s2618_s25, 4  ;;  %s2491_s26 = int_to_ptr.vmem [resolvable:$false] %s2490_s26 }
  0x2e   : > { %s2492_s23 = scalar_lea.vmem %s2491_s26, 2048  ;;  %p2493_p9 = scmp.lt.s32.totalorder %s2754_s7, %s2491_s26 }
  0x2f   : > { %p2488_p5 = pnand %p2486_p2, %p2472_p3  ;;  %p2494_p4 = scmp.lt.s32.totalorder %s2492_s23, %s2485_s24 }
  0x31   : > { %p2489_p11 = pneg %p2488_p5  ;;  %p2495_p7 = por %p2494_p4, %p2493_p9 }
  0x33   : > { %p2496_p10 = pnand %p2495_p7, %p2489_p11 }
  0x35   : > { %2499 = shalt.err (!%p2496_p10)
}
  0x36   : > { %s3746_s17 = smov 64   ;;  %s2620_s16 = smov 4  }
  0x37   : > { %2329 = dma.hbm_to_vmem [thread:$0]  (!%p2758_p0), %s2750_s27, 1024, %s2754_s7, %s285_s15, %s3746_s17, %s3746_s17, %s2620_s16  }
  0x38   : > { %p330_p9 = scmp.lt.s32.totalorder %s2616_s12, 3  ;;  %s3757_s24 = sshll.u32 %s2612_s11, 10 }
  0x39   : > { %s2800_s26 = scalar_lea.hbm %s3734_s1, %s3757_s24  ;;  %p3758_p11 = scmp.ge.s32.totalorder %s2616_s12, 1 }
  0x3a   : > { %s3760_s0 = sshll.u32 %s2741_s22, 6  ;;  %s309_s27 = scalar_lea.sflag [#allocation8], %s2741_s22 }
  0x3b   : > { %p2804_p12 = pnand %p3758_p11, %p330_p9  ;;  %s312_s14 = scalar_lea.vmem [#allocation7], %s3760_s0 }
  0x3c   : > { %s322_s20 = sshll.u32 %s312_s14, 4  ;;  %s2500_s7 = scalar_lea.hbm %s2800_s26, 1024  ;;  %s2810_s20 = int_to_ptr.vmem [resolvable:$true] %s322_s20 }
  0x3d   : > { %p2501_p1 = scmp.ne.s32.totalorder %s2800_s26, %s2500_s7  ;;  %s2505_s28 = scalar_lea.hbm %s3734_s1, 2048 }
  0x3e   : > { %p2506_p2 = scmp.lt.u32.totalorder %s2800_s26, %s3734_s1  ;;  %p2507_p5 = scmp.lt.u32.totalorder %s2505_s28, %s2500_s7 }
  0x3f   : > { %p2503_p6 = pnand %p2501_p1, %p2472_p3  ;;  %p2509_p7 = scmp.lt.u32.totalorder %s2500_s7, %s2800_s26 }
  0x40   : > { %p2508_p4 = por %p2507_p5, %p2506_p2 }
  0x41   : > { %p2504_p13 = pneg %p2503_p6 }
  0x42   : > { %p2510_p10 = por %p2509_p7, %p2508_p4 }
  0x44   : > { %p2511_p9 = pnand %p2510_p10, %p2504_p13 }
  0x46   : > { %2514 = shalt.err (!%p2511_p9)
}
  0x47   : > { %s2515_s0 = scalar_lea.vmem %s2810_s20, 1024  ;;  %s2621_s14 = smov [#allocation7]  }
  0x48   : > { %p2516_p11 = scmp.ne.s32.totalorder %s2810_s20, %s2515_s0  ;;  %s2520_s15 = sshll.u32 %s2621_s14, 4  ;;  %s2521_s15 = int_to_ptr.vmem [resolvable:$false] %s2520_s15 }
  0x49   : > { %s2522_s17 = scalar_lea.vmem %s2521_s15, 2048  ;;  %p2523_p8 = scmp.lt.s32.totalorder %s2810_s20, %s2521_s15 }
  0x4a   : > { %p2518_p1 = pnand %p2516_p11, %p2472_p3  ;;  %p2524_p2 = scmp.lt.s32.totalorder %s2522_s17, %s2515_s0 }
  0x4c   : > { %p2519_p6 = pneg %p2518_p1  ;;  %p2525_p5 = por %p2524_p2, %p2523_p8 }
  0x4e   : > { %p2526_p4 = pnand %p2525_p5, %p2519_p6 }
  0x50   : > { %2529 = shalt.err (!%p2526_p4)
}
  0x51   : > { %s3761_s7 = smov 64   ;;  %334 = sbr.rel (%p2804_p12) target bundleno = 1234 (0x4d2), region = 52 }
  0x52   : > { %2332 = dma.hbm_to_vmem [thread:$0]  (!%p2758_p0), %s2800_s26, 1024, %s2810_s20, %s309_s27, %s3761_s7, %s3761_s7, %s2620_s16  }
  0x53   : > { %s2844_s24 = sand.u32 (!%p2804_p12), 1, %s2600_s30   ;;  %p3762_p8 = scmp.ne.s32.totalorder (!%p2804_p12), %s3751_s18, 0 }
  0x54   : > { %s2296_s28 = sshll.u32 (!%p2804_p12), %s2844_s24, 6  ;;  %s337_s25 = scalar_lea.sflag (!%p2804_p12), [#allocation5], %s2844_s24 }
  0x55   : > { %s2848_s13 = scalar_lea.vmem (!%p2804_p12), [#allocation4], %s2296_s28 }
  0x58   : > { %2583 = dma.done.wait (%p3762_p8), %s337_s25, 1024  }
  0x59   : > { %2585 = vsyncadd (%p3762_p8), %s337_s25, 4294966272  ;;  %s346_s20 = scalar_lea.sflag [#allocation8], %s2844_s24  ;;  %s2855_s22 = scalar_lea.vmem [#allocation7], %s2296_s28 }
  0x5a   : > { %2587 = dma.done.wait (%p3762_p8), %s346_s20, 1024  }
  0x5b   : > { %2589 = vsyncadd (%p3762_p8), %s346_s20, 4294966272  ;;  %vm425_vm0 = vcmask 254976   ;;  %v2622_v0 = vmov 0.0   ;;  %vm428_vm1 = vcmask 257024   ;;  %v2863_v1 = vld [vmem:[%s2848_s13] sm:$0xf] }
  0x5c   : > { %426 = vst.msk [vmem:[#allocation2] sm:$0x3] %vm425_vm0, %v2622_v0  ;;  %v2866_v2 = vld [vmem:[%s2848_s13 + $0x4] sm:$0xf]  ;;  %v480_v3 = vsel %vm428_vm1, %v2863_v1, 0.0  ;;  %vm473_vm2 = vcmask 1041409  }
  0x5d   : > { %481 = vadd.xlane.f32.xlu1 %v480_v3  ;;  %v483_v4 = vsel %vm428_vm1, %v2866_v2, 0.0  ;;  %v2873_v5 = vld [vmem:[%s2848_s13 + $0xc] sm:$0xf]  ;;  %v2876_v6 = vld [vmem:[%s2848_s13 + $0x8] sm:$0xf]  ;;  %vm1007_vm3 = vcmask 25600  }
  0x5e   : > { %v486_v7 = vsel %vm428_vm1, %v2876_v6, 0.0  ;;  %v2881_v8 = vld [vmem:[%s2848_s13 + $0x10] sm:$0xf]  ;;  %v489_v9 = vsel %vm428_vm1, %v2873_v5, 0.0  ;;  %v2888_v11 = vld [vmem:[%s2848_s13 + $0x14] sm:$0xf] }
  0x5f   : > { %487 = vadd.xlane.f32.xlu0 %v486_v7  ;;  %v492_v10 = vsel %vm428_vm1, %v2881_v8, 0.0  ;;  %v2891_v12 = vld [vmem:[%s2848_s13 + $0x18] sm:$0xf]  ;;  %v405_v13 = vld [vmem:[%s2855_s22] sm:$0xf]  ;;  %v495_v16 = vsel %vm428_vm1, %v2888_v11, 0.0 }
  0x60   : > { %v407_v14 = vld [vmem:[%s2855_s22 + $0x8] sm:$0xf]  ;;  %v409_v15 = vld [vmem:[%s2855_s22 + $0x10] sm:$0xf]  ;;  %v498_v17 = vsel %vm428_vm1, %v2891_v12, 0.0  ;;  %v429_v19 = vsel %vm428_vm1, %v405_v13, 0.0 }
  0x61   : > { %484 = vadd.xlane.f32.xlu1 %v483_v4  ;;  %v2901_v18 = vld [vmem:[%s2848_s13 + $0x20] sm:$0xf]  ;;  %v406_v20 = vld [vmem:[%s2855_s22 + $0x4] sm:$0xf]  ;;  %v408_v21 = vld [vmem:[%s2855_s22 + $0xc] sm:$0xf] }
  0x62   : > { %v411_v22 = vld [vmem:[%s2855_s22 + $0x18] sm:$0xf]  ;;  %v2908_v23 = vld [vmem:[%s2848_s13 + $0x1c] sm:$0xf]  ;;  %v410_v24 = vld [vmem:[%s2855_s22 + $0x14] sm:$0xf] }
  0x63   : > { %493 = vadd.xlane.f32.xlu0 %v492_v10  ;;  %v430_v25 = vsel %vm428_vm1, %v407_v14, 0.0  ;;  %v432_v26 = vsel %vm428_vm1, %v409_v15, 0.0  ;;  %v412_v27 = vld [vmem:[%s2855_s22 + $0x1c] sm:$0xf]  ;;  %v413_v28 = vld [vmem:[%s2855_s22 + $0x20] sm:$0xf] }
  0x64   : > { %v431_v29 = vadd.f32 %v430_v25, %v429_v19  ;;  %v504_v30 = vsel %vm428_vm1, %v2901_v18, 0.0  ;;  %v434_v31 = vsel %vm428_vm1, %v411_v22, 0.0  ;;  %v450_v32 = vsel %vm428_vm1, %v406_v20, 0.0  ;;  %v414_v35 = vld [vmem:[%s2855_s22 + $0x24] sm:$0xf]  ;;  %s2023_s23 = sld [smem:[#allocation3]] }
  0x65   : > { %490 = vadd.xlane.f32.xlu1 %v489_v9  ;;  %v451_v33 = vsel %vm428_vm1, %v408_v21, 0.0  ;;  %v501_v34 = vsel %vm428_vm1, %v2908_v23, 0.0  ;;  %v415_v36 = vld [vmem:[%s2855_s22 + $0x28] sm:$0xf]  ;;  %v453_v39 = vsel %vm428_vm1, %v410_v24, 0.0  ;;  %v436_v41 = vsel %vm428_vm1, %v413_v28, 0.0 }
  0x66   : > { %v433_v37 = vadd.f32 %v432_v26, %v431_v29  ;;  %v452_v38 = vadd.f32 %v451_v33, %v450_v32  ;;  %v2926_v40 = vld [vmem:[%s2848_s13 + $0x24] sm:$0xf]  ;;  %v455_v42 = vsel %vm428_vm1, %v412_v27, 0.0  ;;  %v416_v43 = vld [vmem:[%s2855_s22 + $0x2c] sm:$0xf]  ;;  %v438_v47 = vsel %vm428_vm1, %v415_v36, 0.0 }
  0x67   : > { %499 = vadd.xlane.f32.xlu0 %v498_v17  ;;  %v417_v44 = vld [vmem:[%s2855_s22 + $0x30] sm:$0xf]  ;;  %v457_v48 = vsel %vm428_vm1, %v414_v35, 0.0  ;;  %v507_v49 = vsel %vm428_vm1, %v2926_v40, 0.0  ;;  %v418_v50 = vld [vmem:[%s2855_s22 + $0x34] sm:$0xf] }
  0x68   : > { %v435_v45 = vadd.f32 %v434_v31, %v433_v37  ;;  %v454_v46 = vadd.f32 %v453_v39, %v452_v38  ;;  %v419_v51 = vld [vmem:[%s2855_s22 + $0x38] sm:$0xf]  ;;  %v2939_v54 = vld [vmem:[%s2848_s13 + $0x2c] sm:$0xf]  ;;  %v440_v55 = vsel %vm428_vm1, %v417_v44, 0.0  ;;  %v459_v56 = vsel %vm428_vm1, %v416_v43, 0.0 }
  0x69   : > { %496 = vadd.xlane.f32.xlu1 %v495_v16  ;;  %v420_v57 = vld [vmem:[%s2855_s22 + $0x3c] sm:$0xf]  ;;  %v442_v60 = vsel %vm428_vm1, %v419_v51, 0.0  ;;  %v461_v61 = vsel %vm428_vm1, %v418_v50, 0.0  ;;  %v513_v62 = vsel %vm428_vm1, %v2939_v54, 0.0  ;;  %v942_v31 = vlaneseq  ;;  %s2319_s27 = sshll.u32 %s2608_s10, 8 }
  0x6a   : > { %v437_v52 = vadd.f32 %v436_v41, %v435_v45  ;;  %v456_v53 = vadd.f32 %v455_v42, %v454_v46  ;;  %v2949_v3 = vld [vmem:[%s2848_s13 + $0x34] sm:$0xf]  ;;  %v463_v4 = vsel %vm428_vm1, %v420_v57, 0.0  ;;  %v2955_v15 = vld [vmem:[%s2848_s13 + $0x3c] sm:$0xf]  ;;  %vm759_vm4 = vcmask 1043456   ;;  %s3676_s17 = scalar_lea.hbm %s3741_s8, %s2319_s27 }
  0x6b   : > { %505 = vadd.xlane.f32.xlu0 %v504_v30  ;;  %v519_v10 = vsel %vm428_vm1, %v2949_v3, 0.0  ;;  %v525_v19 = vsel %vm428_vm1, %v2955_v15, 0.0  ;;  %v427_v29 = vld [vmem:[#allocation2] sm:$0x3]  ;;  %v2961_v36 = vshrl.u32 %v942_v31, 7  ;;  %vm1929_vm5 = vcmask 1042434  }
  0x6c   : > { %v439_v58 = vadd.f32 %v438_v47, %v437_v52  ;;  %v458_v59 = vadd.f32 %v457_v48, %v456_v53  ;;  %v1088_v37 = vld [vmem:[%s3739_s6] sm:$0xff]  ;;  %vm1931_vm6 = vcmask 1043459   ;;  %vm1933_vm7 = vcmask 1044484   ;;  %s2160_s10 = scalar_lea.sflag [#allocation6], %s2844_s24  ;;  %p3764_p3 = scmp.ne.s32.totalorder %s3752_s19, 0 }
  0x6d   : > { %502 = vadd.xlane.f32.xlu1 %v501_v34  ;;  %v2623_v34 = vmov 1966171168   ;;  %v2968_v38 = vsub.s32 0, %v2961_v36  ;;  %v2972_v42 = vsub.s32 5, %v2961_v36  ;;  %v2977_v46 = vsub.s32 7, %v2961_v36  ;;  %s2625_s28 = smov [#allocation9]  }
  0x6e   : > { %v441_v63 = vadd.f32 %v440_v55, %v439_v58  ;;  %v460_v0 = vadd.f32 %v459_v56, %v458_v59  ;;  %v940_v35 = vunpack.c.l.s4 %v2623_v34  ;;  %v937_v52 = vld [vmem:[%s3736_s3] sm:$0xf]  ;;  %vm1935_vm8 = vcmask 1045509   ;;  %s2534_s25 = sshll.u32 %s2625_s28, 4  ;;  %s2535_s25 = int_to_ptr.vmem [resolvable:$false] %s2534_s25 }
  0x6f   : > { %v1099_v41 = vrot.slane %v1088_v37, %v2968_v38  ;;  %v1134_v45 = vrot.slane %v1088_v37, %v2972_v42  ;;  %vm1937_vm9 = vcmask 1046534   ;;  %vm1939_vm10 = vcmask 1047559  }
  0x70   : > { %v443_v7 = vadd.f32 %v442_v60, %v441_v63  ;;  %v462_v9 = vadd.f32 %v461_v61, %v460_v0  ;;  %v941_v39 = vunpack.c.0.s8 %v940_v35  ;;  %v2988_v61 = vld [vmem:[%s2848_s13 + $0x28] sm:$0xf]  ;;  %v2993_v63 = vld [vmem:[%s2848_s13 + $0x30] sm:$0xf]  ;;  %vm1998_vm11 = vcmask 31744  }
  0x71   : > { %508 = vadd.xlane.f32.xlu1 %v507_v49  ;;  %v1148_v49 = vrot.slane %v1088_v37, %v2977_v46  ;;  %v516_v0 = vsel %vm428_vm1, %v2993_v63, 0.0  ;;  %vm2058_vm12 = vcmask 130112   ;;  %vm2065_vm13 = vcmask 195712  }
  0x72   : > { %v444_v13 = vrot.slane %v443_v7, 4  ;;  %v464_v14 = vadd.f32 %v463_v4, %v462_v9  ;;  %v944_v43 = vsub.s32 %v941_v39, %v2961_v36  ;;  %v2998_v4 = vld [vmem:[%s2848_s13 + $0x38] sm:$0xf]  ;;  %v2302_v9 = vld [vmem:[%s3737_s4] ss:$0 sm:$0xff]  ;;  %s2298_s13 = sshll.u32 %s2844_s24, 4 }
  0x73   : > { %s3226_s20 = scalar_lea.vmem [#allocation9], %s2298_s13  ;;  %vm2072_vm14 = vcmask 261312   ;;  %s2536_s13 = scalar_lea.vmem %s2535_s25, 512 }
  0x74   : > { %v445_v16 = vadd.f32 %v444_v13, %v443_v7  ;;  %v465_v17 = vrot.slane %v464_v14, 4  ;;  %v522_v7 = vsel %vm428_vm1, %v2998_v4, 0.0  ;;  %v2303_v13 = vld [vmem:[%s3738_s5] ss:$0 sm:$0xff]  ;;  %s2173_s0 = sshll.u32 %s3226_s20, 4  ;;  %s3678_s0 = int_to_ptr.vmem [resolvable:$true] %s2173_s0 }
  0x75   : > { %514 = vadd.xlane.f32.xlu1 %v513_v62  ;;  %v510_v62 = vsel %vm428_vm1, %v2988_v61, 0.0  ;;  %s2530_s7 = scalar_lea.vmem %s3678_s0, 256  ;;  %p2537_p7 = scmp.lt.s32.totalorder %s3678_s0, %s2535_s25 }
  0x76   : > { %v446_v20 = vrot.slane %v445_v16, 2  ;;  %v466_v21 = vadd.f32 %v465_v17, %v464_v14  ;;  %p2531_p0 = scmp.ne.s32.totalorder %s3678_s0, %s2530_s7  ;;  %p2538_p10 = scmp.lt.s32.totalorder %s2536_s13, %s2530_s7 }
  0x78   : > { %v447_v22 = vadd.f32 %v446_v20, %v445_v16  ;;  %v467_v24 = vrot.slane %v466_v21, 2  ;;  %v3013_v16 = vsub.s32 2, %v2961_v36  ;;  %p2532_p12 = pnand %p2531_p0, %p3764_p3  ;;  %p2539_p9 = por %p2538_p10, %p2537_p7 }
  0x79   : > { %520 = vadd.xlane.f32.xlu1 %v519_v10  ;;  %v3006_v10 = vsub.s32 1, %v2961_v36 }
  0x7a   : > { %v448_v25 = vrot.slane %v447_v22, 1  ;;  %v468_v26 = vadd.f32 %v467_v24, %v466_v21  ;;  %v1113_v17 = vrot.slane %v1088_v37, %v3013_v16  ;;  %v3021_v21 = vsub.s32 4, %v2961_v36  ;;  %p2533_p13 = pneg %p2532_p12 }
  0x7b   : > { %v1106_v14 = vrot.slane %v1088_v37, %v3006_v10  ;;  %v3025_v24 = vsub.s32 6, %v2961_v36 }
  0x7c   : > { %v449_v27 = vadd.f32 %v448_v25, %v447_v22  ;;  %v469_v28 = vrot.slane %v468_v26, 1  ;;  %v1127_v22 = vrot.slane %v1088_v37, %v3021_v21  ;;  %p2540_p11 = pnand %p2539_p9, %p2533_p13 }
  0x7d   : > { %526 = vadd.xlane.f32.xlu1 %v525_v19  ;;  %v3017_v19 = vsub.s32 3, %v2961_v36  ;;  %v1141_v25 = vrot.slane %v1088_v37, %v3025_v24 }
  0x7e   : > { %v470_v30 = vadd.f32 %v469_v28, %v468_v26 }
  0x7f   : > { %v1120_v20 = vrot.slane %v1088_v37, %v3017_v19 }
  0x80   : > { %v474_v32 = vsel %vm473_vm2, %v470_v30, %v449_v27 }
  0x81   : > { %v476_v33 = vadd.f32 %v474_v32, %v427_v29 }
  0x83   : > { %478 = vst.msk [vmem:[#allocation2] sm:$0x3] %vm425_vm0, %v476_v33 }
  0x8a   : > { %v935_v44 = vld [vmem:[#allocation2] sm:$0x3] }
  0x8b   : > { %v936_v47 = vmul.f32 0.03125, %v935_v44 }
  0x8d   : > { %v945_v48 = vrot.slane %v936_v47, %v944_v43 }
  0x8e   : > { %1101 = vbcast.lane.b32.xlu1 %v1099_v41, 256 }
  0x8f   : > { %v953_v50 = vrot.slane %v945_v48, %v944_v43  ;;  %v946_v51 = vcombine.high %v945_v48, %v945_v48 }
  0x91   : > { %v964_v53 = vrot.slane %v953_v50, %v2968_v38  ;;  %v960_v55 = vrot.slane %v946_v51, %v944_v43 }
  0x92   : > { %1136 = vbcast.lane.b32.xlu1 %v1134_v45, 256 }
  0x93   : > { %v971_v56 = vmul.f32 %v964_v53, %v937_v52  ;;  %v968_v57 = vrot.slane %v960_v55, %v2968_v38 }
  0x95   : > { %v973_v58 = vsel %vm428_vm1, %v971_v56, 0.0  ;;  %v972_v59 = vmul.f32 %v968_v57, %v937_v52 }
  0x96   : > { %1150 = vbcast.lane.b32.xlu1 %v1148_v49, 256  ;;  %974 = vadd.xlane.f32.xlu0 %v973_v58 }
  0x97   : > { %v976_v60 = vsel %vm428_vm1, %v972_v59, 0.0 }
  0x9a   : > { %977 = vadd.xlane.f32.xlu0 %v976_v60 }
  0x9e   : > { %511 = vadd.xlane.f32.xlu0 %v510_v62 }
  0xa2   : > { %517 = vadd.xlane.f32.xlu0 %v516_v0 }
  0xa6   : > { %523 = vadd.xlane.f32.xlu0 %v522_v7 }
  0xbc   : > { %1071 = vbcast.lane.b32.xlu0 %v2302_v9, 256 }
  0xc0   : > { %1083 = vbcast.lane.b32.xlu0 %v2303_v13, 256 }
  0xc4   : > { %1108 = vbcast.lane.b32.xlu0 %v1106_v14, 256 }
  0xc8   : > { %1115 = vbcast.lane.b32.xlu0 %v1113_v17, 256 }
  0xcc   : > { %1122 = vbcast.lane.b32.xlu0 %v1120_v20, 256 }
  0xd0   : > { %1129 = vbcast.lane.b32.xlu0 %v1127_v22, 256 }
  0xd4   : > { %1143 = vbcast.lane.b32.xlu0 %v1141_v25, 256 }
  0xea   : > { %v482_v26 = vpop.xlane.xlu1 %481 }
  0xeb   : > { %v529_v27 = vmul.f32 0.03125, %v482_v26 }
  0xec   : > { %v488_v29 = vpop.xlane.xlu0 %487 }
  0xed   : > { %v3029_v28 = vsub.f32 %v2863_v1, %v529_v27  ;;  %v531_v32 = vmul.f32 0.03125, %v488_v29 }
  0xee   : > { %v485_v30 = vpop.xlane.xlu1 %484 }
  0xef   : > { %v530_v33 = vmul.f32 0.03125, %v485_v30  ;;  %v3032_v34 = vsub.f32 %v2876_v6, %v531_v32  ;;  %v561_v35 = vmul.f32 %v3029_v28, %v3029_v28 }
  0xf0   : > { %v494_v37 = vpop.xlane.xlu0 %493 }
  0xf1   : > { %v3037_v39 = vsub.f32 %v2866_v2, %v530_v33  ;;  %v533_v43 = vmul.f32 0.03125, %v494_v37  ;;  %v577_v45 = vsel %vm428_vm1, %v561_v35, 0.0  ;;  %v563_v6 = vmul.f32 %v3032_v34, %v3032_v34 }
  0xf2   : > { %v491_v41 = vpop.xlane.xlu1 %490 }
  0xf3   : > { %v532_v44 = vmul.f32 0.03125, %v491_v41  ;;  %v562_v1 = vmul.f32 %v3037_v39, %v3037_v39  ;;  %v3043_v47 = vsub.f32 %v2881_v8, %v533_v43  ;;  %578 = vadd.xlane.f32.xlu0 %v577_v45  ;;  %v583_v55 = vsel %vm428_vm1, %v563_v6, 0.0 }
  0xf4   : > { %v500_v49 = vpop.xlane.xlu0 %499 }
  0xf5   : > { %v3048_v48 = vsub.f32 %v2873_v5, %v532_v44  ;;  %v580_v2 = vsel %vm428_vm1, %v562_v1, 0.0  ;;  %v535_v51 = vmul.f32 0.03125, %v500_v49  ;;  %v565_v56 = vmul.f32 %v3043_v47, %v3043_v47 }
  0xf6   : > { %581 = vadd.xlane.f32.xlu1 %v580_v2  ;;  %v497_v50 = vpop.xlane.xlu1 %496 }
  0xf7   : > { %v534_v52 = vmul.f32 0.03125, %v497_v50  ;;  %v564_v53 = vmul.f32 %v3048_v48, %v3048_v48  ;;  %v551_v8 = vsub.f32 %v2891_v12, %v535_v51  ;;  %584 = vadd.xlane.f32.xlu0 %v583_v55  ;;  %v589_v7 = vsel %vm428_vm1, %v565_v56, 0.0 }
  0xf8   : > { %v506_v58 = vpop.xlane.xlu0 %505 }
  0xf9   : > { %v3058_v5 = vsub.f32 %v2888_v11, %v534_v52  ;;  %v586_v57 = vsel %vm428_vm1, %v564_v53, 0.0  ;;  %v537_v60 = vmul.f32 0.03125, %v506_v58  ;;  %v567_v9 = vmul.f32 %v551_v8, %v551_v8 }
  0xfa   : > { %587 = vadd.xlane.f32.xlu1 %v586_v57  ;;  %v503_v59 = vpop.xlane.xlu1 %502 }
  0xfb   : > { %v536_v62 = vmul.f32 0.03125, %v503_v59  ;;  %v566_v0 = vmul.f32 %v3058_v5, %v3058_v5  ;;  %v553_v12 = vsub.f32 %v2901_v18, %v537_v60  ;;  %590 = vadd.xlane.f32.xlu0 %v589_v7  ;;  %v595_v22 = vsel %vm428_vm1, %v567_v9, 0.0 }
  0xfd   : > { %v3066_v13 = vsub.f32 %v2908_v23, %v536_v62  ;;  %v592_v11 = vsel %vm428_vm1, %v566_v0, 0.0  ;;  %v569_v25 = vmul.f32 %v553_v12, %v553_v12 }
  0xfe   : > { %593 = vadd.xlane.f32.xlu1 %v592_v11  ;;  %v509_v14 = vpop.xlane.xlu1 %508 }
  0xff   : > { %v538_v17 = vmul.f32 0.03125, %v509_v14  ;;  %v568_v20 = vmul.f32 %v3066_v13, %v3066_v13  ;;  %596 = vadd.xlane.f32.xlu0 %v595_v22  ;;  %v601_v30 = vsel %vm428_vm1, %v569_v25, 0.0 }
 0x101   : > { %v3073_v18 = vsub.f32 %v2926_v40, %v538_v17  ;;  %v598_v26 = vsel %vm428_vm1, %v568_v20, 0.0 }
 0x102   : > { %599 = vadd.xlane.f32.xlu1 %v598_v26  ;;  %v515_v23 = vpop.xlane.xlu1 %514 }
 0x103   : > { %v540_v27 = vmul.f32 0.03125, %v515_v23  ;;  %v570_v29 = vmul.f32 %v3073_v18, %v3073_v18  ;;  %602 = vadd.xlane.f32.xlu0 %v601_v30 }
 0x105   : > { %v3080_v32 = vsub.f32 %v2939_v54, %v540_v27  ;;  %v604_v33 = vsel %vm428_vm1, %v570_v29, 0.0 }
 0x106   : > { %605 = vadd.xlane.f32.xlu1 %v604_v33  ;;  %v521_v35 = vpop.xlane.xlu1 %520 }
 0x107   : > { %v542_v40 = vmul.f32 0.03125, %v521_v35  ;;  %v572_v37 = vmul.f32 %v3080_v32, %v3080_v32 }
 0x109   : > { %v3086_v41 = vsub.f32 %v2949_v3, %v542_v40  ;;  %v610_v43 = vsel %vm428_vm1, %v572_v37, 0.0  ;;  %v3100_v3 = vld [vmem:[%s3735_s2] ss:$0 sm:$0xff] }
 0x10a   : > { %611 = vadd.xlane.f32.xlu1 %v610_v43  ;;  %v527_v44 = vpop.xlane.xlu1 %526  ;;  %v648_v50 = vmul.f32 %v3100_v3, %v3037_v39  ;;  %v650_v51 = vmul.f32 %v3100_v3, %v3048_v48  ;;  %v653_v53 = vmul.f32 %v3100_v3, %v551_v8  ;;  %v655_v56 = vmul.f32 %v3100_v3, %v553_v12 }
 0x10b   : > { %v544_v1 = vmul.f32 0.03125, %v527_v44  ;;  %v574_v54 = vmul.f32 %v3086_v41, %v3086_v41  ;;  %v647_v43 = vmul.f32 %v3100_v3, %v3029_v28 }
 0x10c   : > { %v672_v52 = vsel %vm428_vm1, %v650_v51, 0.0  ;;  %v681_v55 = vsel %vm428_vm1, %v653_v53, 0.0  ;;  %v687_v57 = vsel %vm428_vm1, %v655_v56, 0.0 }
 0x10d   : > { %v3092_v45 = vsub.f32 %v2955_v15, %v544_v1  ;;  %v616_v6 = vsel %vm428_vm1, %v574_v54, 0.0  ;;  %v666_v15 = vsel %vm428_vm1, %v648_v50, 0.0  ;;  %v663_v54 = vsel %vm428_vm1, %v647_v43, 0.0 }
 0x10e   : > { %617 = vadd.xlane.f32.xlu1 %v616_v6  ;;  %v649_v6 = vmul.f32 %v3100_v3, %v3032_v34 }
 0x10f   : > { %v576_v2 = vmul.f32 %v3092_v45, %v3092_v45 }
 0x111   : > { %v622_v49 = vsel %vm428_vm1, %v576_v2, 0.0 }
 0x112   : > { %623 = vadd.xlane.f32.xlu1 %v622_v49 }
 0x116   : > { %667 = vadd.xlane.f32.xlu1 %v666_v15  ;;  %v669_v15 = vsel %vm428_vm1, %v649_v6, 0.0 }
 0x11a   : > { %673 = vadd.xlane.f32.xlu1 %v672_v52 }
 0x11e   : > { %682 = vadd.xlane.f32.xlu1 %v681_v55  ;;  %v652_v55 = vmul.f32 %v3100_v3, %v3058_v5  ;;  %v658_v5 = vmul.f32 %v3100_v3, %v3080_v32  ;;  %v3169_v32 = vpop.permute.xlu1 %1101 }
 0x122   : > { %688 = vadd.xlane.f32.xlu1 %v687_v57  ;;  %v654_v57 = vmul.f32 %v3100_v3, %v3066_v13 }
 0x123   : > { %v975_v39 = vpop.xlane.xlu0 %974 }
 0x124   : > { %v2300_v58 = vmul.f32 -1.442695, %v975_v39 }
 0x126   : > { %2396 = vpow2.f32 %v2300_v58  ;;  %v656_v58 = vmul.f32 %v3100_v3, %v3073_v18 }
 0x127   : > { %v978_v59 = vpop.xlane.xlu0 %977 }
 0x128   : > { %v2301_v60 = vmul.f32 -1.442695, %v978_v59 }
 0x12a   : > { %2398 = vpow2.f32 %v2301_v60  ;;  %v696_v60 = vsel %vm428_vm1, %v658_v5, 0.0 }
 0x12b   : > { %v512_v48 = vpop.xlane.xlu0 %511 }
 0x12c   : > { %v539_v62 = vmul.f32 0.03125, %v512_v48  ;;  %v660_v48 = vmul.f32 %v3100_v3, %v3086_v41 }
 0x12e   : > { %v555_v0 = vsub.f32 %v2988_v61, %v539_v62  ;;  %v702_v13 = vsel %vm428_vm1, %v660_v48, 0.0  ;;  %v662_v62 = vmul.f32 %v3100_v3, %v3092_v45 }
 0x12f   : > { %v518_v8 = vpop.xlane.xlu0 %517 }
 0x130   : > { %v2397_v7 = vpop.eup %2396  ;;  %v541_v9 = vmul.f32 0.03125, %v518_v8  ;;  %v571_v11 = vmul.f32 %v555_v0, %v555_v0  ;;  %v657_v12 = vmul.f32 %v3100_v3, %v555_v0  ;;  %v708_v18 = vsel %vm428_vm1, %v662_v62, 0.0 }
 0x131   : > { %v985_v14 = vadd.f32 1.0, %v2397_v7  ;;  %v2624_v0 = vmov 0   ;;  %v3173_v7 = vpop.permute.xlu1 %1136 }
 0x132   : > { %v557_v17 = vsub.f32 %v2993_v63, %v541_v9  ;;  %v607_v20 = vsel %vm428_vm1, %v571_v11, 0.0  ;;  %v693_v22 = vsel %vm428_vm1, %v657_v12, 0.0  ;;  %2395 = vset.pattern.permute.xlu0 %v2624_v0  ;;  %2394 = vset.pattern.permute.xlu1 %v2624_v0 }
 0x133   : > { %2400 = vrcp.f32 %v985_v14  ;;  %v524_v25 = vpop.xlane.xlu0 %523  ;;  %608 = vadd.xlane.f32.xlu0 %v607_v20  ;;  %694 = vadd.xlane.f32.xlu1 %v693_v22 }
 0x134   : > { %v2399_v26 = vpop.eup %2398  ;;  %v543_v23 = vmul.f32 0.03125, %v524_v25  ;;  %v573_v61 = vmul.f32 %v557_v17, %v557_v17  ;;  %v659_v27 = vmul.f32 %v3100_v3, %v557_v17 }
 0x135   : > { %v986_v29 = vadd.f32 1.0, %v2399_v26  ;;  %v3177_v9 = vpop.permute.xlu1 %1150 }
 0x136   : > { %v559_v30 = vsub.f32 %v2998_v4, %v543_v23  ;;  %v613_v33 = vsel %vm428_vm1, %v573_v61, 0.0  ;;  %v699_v63 = vsel %vm428_vm1, %v659_v27, 0.0  ;;  %v3128_v4 = vand.u32 127, %v942_v31 }
 0x137   : > { %2402 = vrcp.f32 %v986_v29  ;;  %614 = vadd.xlane.f32.xlu0 %v613_v33  ;;  %700 = vadd.xlane.f32.xlu1 %v699_v63  ;;  %v651_v31 = vmul.f32 %v3100_v3, %v3043_v47  ;;  %v678_v47 = vsel %vm428_vm1, %v652_v55, 0.0  ;;  %v3171_v8 = vpop.permute.xlu0 %1071 }
 0x138   : > { %v575_v35 = vmul.f32 %v559_v30, %v559_v30  ;;  %v661_v40 = vmul.f32 %v3100_v3, %v559_v30  ;;  %v3135_v2 = vsub.s32 %v3128_v4, %v2961_v36 }
 0x139   : > { %v675_v52 = vsel %vm428_vm1, %v651_v31, 0.0 }
 0x13a   : > { %v619_v37 = vsel %vm428_vm1, %v575_v35, 0.0  ;;  %v705_v44 = vsel %vm428_vm1, %v661_v40, 0.0 }
 0x13b   : > { %620 = vadd.xlane.f32.xlu0 %v619_v37  ;;  %706 = vadd.xlane.f32.xlu1 %v705_v44  ;;  %v3175_v41 = vpop.permute.xlu0 %1083 }
 0x13d   : > { %v2401_v1 = vpop.eup %2400 }
 0x13e   : > { %v3137_v49 = vmul.f32 %v2401_v1, %v975_v39  ;;  %v684_v39 = vsel %vm428_vm1, %v654_v57, 0.0 }
 0x13f   : > { %664 = vadd.xlane.f32.xlu0 %v663_v54  ;;  %v3179_v11 = vpop.permute.xlu0 %1108 }
 0x140   : > { %v1000_v51 = vrot.slane %v3137_v49, %v3135_v2 }
 0x141   : > { %v2403_v28 = vpop.eup %2402 }
 0x142   : > { %v3139_v50 = vmul.f32 %v2403_v28, %v978_v59  ;;  %v690_v59 = vsel %vm428_vm1, %v656_v58, 0.0 }
 0x143   : > { %670 = vadd.xlane.f32.xlu0 %v669_v15  ;;  %v3181_v12 = vpop.permute.xlu0 %1115 }
 0x144   : > { %v1004_v34 = vrot.slane %v3139_v50, %v3135_v2 }
 0x146   : > { %v1005_v53 = vsel %vm473_vm2, %v1004_v34, %v1000_v51 }
 0x147   : > { %676 = vadd.xlane.f32.xlu0 %v675_v52  ;;  %v1008_v56 = vsel %vm1007_vm3, %v1005_v53, 0.0  ;;  %v3183_v17 = vpop.permute.xlu0 %1122 }
 0x148   : > { %1009 = vadd.xlane.f32.xlu1 %v1008_v56 }
 0x14b   : > { %679 = vadd.xlane.f32.xlu0 %v678_v47  ;;  %v3185_v22 = vpop.permute.xlu0 %1129 }
 0x14f   : > { %685 = vadd.xlane.f32.xlu0 %v684_v39  ;;  %v3187_v26 = vpop.permute.xlu0 %1143 }
 0x153   : > { %691 = vadd.xlane.f32.xlu0 %v690_v59 }
 0x157   : > { %697 = vadd.xlane.f32.xlu0 %v696_v60 }
 0x15b   : > { %703 = vadd.xlane.f32.xlu0 %v702_v13 }
 0x15f   : > { %709 = vadd.xlane.f32.xlu0 %v708_v18 }
 0x180   : > { %v579_v61 = vpop.xlane.xlu0 %578 }
 0x181   : > { %v625_v52 = vmul.f32 0.03125, %v579_v61 }
 0x183   : > { %v582_v45 = vpop.xlane.xlu1 %581  ;;  %v711_v55 = vadd.f32 1e-05, %v625_v52  ;;  %v3199_v52 = vld [vmem:[%s3739_s6 + $0x8] sm:$0xff] }
 0x184   : > { %v585_v27 = vpop.xlane.xlu0 %584  ;;  %v626_v63 = vmul.f32 0.03125, %v582_v45 }
 0x185   : > { %v627_v56 = vmul.f32 0.03125, %v585_v27 }
 0x186   : > { %v712_v35 = vadd.f32 1e-05, %v626_v63 }
 0x187   : > { %v588_v3 = vpop.xlane.xlu1 %587  ;;  %v713_v13 = vadd.f32 1e-05, %v627_v56 }
 0x188   : > { %v591_v30 = vpop.xlane.xlu0 %590  ;;  %v628_v37 = vmul.f32 0.03125, %v588_v3  ;;  %2404 = vrsqrt.f32 %v712_v35 }
 0x189   : > { %v629_v58 = vmul.f32 0.03125, %v591_v30 }
 0x18a   : > { %v714_v1 = vadd.f32 1e-05, %v628_v37 }
 0x18b   : > { %v594_v14 = vpop.xlane.xlu1 %593  ;;  %v715_v45 = vadd.f32 1e-05, %v629_v58 }
 0x18c   : > { %v597_v40 = vpop.xlane.xlu0 %596  ;;  %2406 = vrsqrt.f32 %v714_v1 }
 0x18d   : > { %v631_v44 = vmul.f32 0.03125, %v597_v40 }
 0x18f   : > { %v600_v20 = vpop.xlane.xlu1 %599  ;;  %v717_v6 = vadd.f32 1e-05, %v631_v44 }
 0x190   : > { %v603_v54 = vpop.xlane.xlu0 %602 }
 0x191   : > { %v633_v15 = vmul.f32 0.03125, %v603_v54  ;;  %2408 = vrsqrt.f32 %v717_v6  ;;  %v632_v54 = vmul.f32 0.03125, %v600_v20 }
 0x192   : > { %v2405_v34 = vpop.eup %2404 }
 0x193   : > { %v606_v25 = vpop.xlane.xlu1 %605  ;;  %v719_v31 = vadd.f32 1e-05, %v633_v15  ;;  %v718_v58 = vadd.f32 1e-05, %v632_v54 }
 0x194   : > { %v634_v15 = vmul.f32 0.03125, %v606_v25 }
 0x195   : > { %2410 = vrsqrt.f32 %v719_v31 }
 0x196   : > { %v2407_v47 = vpop.eup %2406  ;;  %2412 = vrsqrt.f32 %v711_v55  ;;  %v720_v25 = vadd.f32 1e-05, %v634_v15 }
 0x197   : > { %v612_v23 = vpop.xlane.xlu1 %611 }
 0x198   : > { %v636_v31 = vmul.f32 0.03125, %v612_v23 }
 0x19a   : > { %v722_v23 = vadd.f32 1e-05, %v636_v31 }
 0x19b   : > { %v3189_v29 = vpop.xlane.xlu1 %617  ;;  %v2409_v60 = vpop.eup %2408 }
 0x19f   : > { %v3191_v33 = vpop.xlane.xlu1 %623  ;;  %v2411_v40 = vpop.eup %2410 }
 0x1a0   : > { %v2413_v56 = vpop.eup %2412 }
 0x1a3   : > { %v668_v43 = vpop.xlane.xlu1 %667 }
 0x1a4   : > { %v744_v53 = vmul.f32 %v2405_v34, %v668_v43  ;;  %v630_v43 = vmul.f32 0.03125, %v594_v14 }
 0x1a6   : > { %v767_v57 = vsel %vm759_vm4, %v744_v53, 0.0 }
 0x1a7   : > { %v674_v28 = vpop.xlane.xlu1 %673  ;;  %v768_v62 = vrot.slane %v767_v57, 4 }
 0x1a8   : > { %v746_v59 = vmul.f32 %v2407_v47, %v674_v28  ;;  %v716_v47 = vadd.f32 1e-05, %v630_v43 }
 0x1a9   : > { %v769_v35 = vadd.f32 %v768_v62, %v767_v57 }
 0x1aa   : > { %v781_v3 = vsel %vm759_vm4, %v746_v59, 0.0  ;;  %v1162_v59 = vrot.slane %v3199_v52, %v3006_v10 }
 0x1ab   : > { %v683_v51 = vpop.xlane.xlu1 %682  ;;  %v782_v30 = vrot.slane %v781_v3, 4 }
 0x1ac   : > { %v749_v61 = vmul.f32 %v2409_v60, %v683_v51  ;;  %v770_v51 = vrot.slane %v769_v35, 2 }
 0x1ad   : > { %v783_v53 = vadd.f32 %v782_v30, %v781_v3  ;;  %v638_v3 = vmul.f32 0.03125, %v3189_v29 }
 0x1ae   : > { %v802_v44 = vsel %vm759_vm4, %v749_v61, 0.0 }
 0x1af   : > { %v689_v39 = vpop.xlane.xlu1 %688  ;;  %v803_v55 = vrot.slane %v802_v44, 4 }
 0x1b0   : > { %v751_v34 = vmul.f32 %v2411_v40, %v689_v39 }
 0x1b2   : > { %v816_v39 = vsel %vm759_vm4, %v751_v34, 0.0 }
 0x1b3   : > { %v817_v40 = vrot.slane %v816_v39, 4 }
 0x1c0   : > { %v609_v5 = vpop.xlane.xlu0 %608  ;;  %v695_v0 = vpop.xlane.xlu1 %694 }
 0x1c1   : > { %v635_v48 = vmul.f32 0.03125, %v609_v5  ;;  %v771_v5 = vadd.f32 %v770_v51, %v769_v35  ;;  %v640_v35 = vmul.f32 0.03125, %v3191_v33 }
 0x1c3   : > { %v721_v18 = vadd.f32 1e-05, %v635_v48  ;;  %v784_v48 = vrot.slane %v783_v53, 2  ;;  %v772_v43 = vrot.slane %v771_v5, 1 }
 0x1c4   : > { %v615_v63 = vpop.xlane.xlu0 %614  ;;  %v701_v28 = vpop.xlane.xlu1 %700 }
 0x1c5   : > { %2414 = vrsqrt.f32 %v721_v18  ;;  %v637_v27 = vmul.f32 0.03125, %v615_v63 }
 0x1c6   : > { %2416 = vrsqrt.f32 %v713_v13  ;;  %v804_v13 = vadd.f32 %v803_v55, %v802_v44  ;;  %v726_v55 = vadd.f32 1e-05, %v640_v35 }
 0x1c7   : > { %v723_v37 = vadd.f32 1e-05, %v637_v27  ;;  %2418 = vrsqrt.f32 %v715_v45 }
 0x1c8   : > { %v621_v1 = vpop.xlane.xlu0 %620  ;;  %v3205_v18 = vpop.xlane.xlu1 %706  ;;  %v805_v15 = vrot.slane %v804_v13, 2 }
 0x1c9   : > { %2420 = vrsqrt.f32 %v723_v37  ;;  %v639_v6 = vmul.f32 0.03125, %v621_v1 }
 0x1cb   : > { %v725_v14 = vadd.f32 1e-05, %v639_v6  ;;  %v785_v6 = vadd.f32 %v784_v48, %v783_v53 }
 0x1cc   : > { %v665_v57 = vpop.xlane.xlu0 %664 }
 0x1cd   : > { %v743_v20 = vmul.f32 %v2413_v56, %v665_v57  ;;  %2422 = vrsqrt.f32 %v725_v14  ;;  %v818_v14 = vadd.f32 %v817_v40, %v816_v39  ;;  %v786_v53 = vrot.slane %v785_v6, 1 }
 0x1ce   : > { %2424 = vrsqrt.f32 %v716_v47 }
 0x1cf   : > { %v2415_v60 = vpop.eup %2414  ;;  %v760_v62 = vsel %vm759_vm4, %v743_v20, 0.0  ;;  %2426 = vrsqrt.f32 %v718_v58  ;;  %v773_v58 = vadd.f32 %v772_v43, %v771_v5 }
 0x1d0   : > { %v2417_v45 = vpop.eup %2416  ;;  %v753_v61 = vmul.f32 %v2415_v60, %v695_v0  ;;  %v761_v63 = vrot.slane %v760_v62, 4  ;;  %v671_v27 = vpop.xlane.xlu0 %670  ;;  %2428 = vrsqrt.f32 %v720_v25  ;;  %v724_v0 = vadd.f32 1e-05, %v638_v3 }
 0x1d1   : > { %v745_v30 = vmul.f32 %v2417_v45, %v671_v27  ;;  %v2419_v37 = vpop.eup %2418  ;;  %2430 = vrsqrt.f32 %v722_v23  ;;  %v806_v60 = vadd.f32 %v805_v15, %v804_v13 }
 0x1d2   : > { %v762_v44 = vadd.f32 %v761_v63, %v760_v62  ;;  %v830_v31 = vsel %vm759_vm4, %v753_v61, 0.0  ;;  %2432 = vrsqrt.f32 %v724_v0 }
 0x1d3   : > { %v2421_v54 = vpop.eup %2420  ;;  %v774_v29 = vsel %vm759_vm4, %v745_v30, 0.0  ;;  %v831_v48 = vrot.slane %v830_v31, 4  ;;  %2434 = vrsqrt.f32 %v726_v55  ;;  %v807_v15 = vrot.slane %v806_v60, 1 }
 0x1d4   : > { %v763_v51 = vrot.slane %v762_v44, 2  ;;  %v775_v33 = vrot.slane %v774_v29, 4  ;;  %v677_v34 = vpop.xlane.xlu0 %676  ;;  %v755_v56 = vmul.f32 %v2421_v54, %v701_v28  ;;  %v819_v28 = vrot.slane %v818_v14, 2 }
 0x1d5   : > { %v747_v47 = vmul.f32 %v2419_v37, %v677_v34  ;;  %v1010_v57 = vpop.xlane.xlu1 %1009  ;;  %v787_v54 = vadd.f32 %v786_v53, %v785_v6 }
 0x1d6   : > { %v764_v20 = vadd.f32 %v763_v51, %v762_v44  ;;  %v776_v25 = vadd.f32 %v775_v33, %v774_v29  ;;  %v1011_v23 = vmul.f32 0.25, %v1010_v57  ;;  %v844_v5 = vsel %vm759_vm4, %v755_v56, 0.0 }
 0x1d7   : > { %v788_v62 = vsel %vm759_vm4, %v747_v47, 0.0  ;;  %v2423_v27 = vpop.eup %2422  ;;  %v874_v44 = vmul.f32 0.25, %v773_v58  ;;  %v832_v29 = vadd.f32 %v831_v48, %v830_v31  ;;  %v820_v57 = vadd.f32 %v819_v28, %v818_v14 }
 0x1d8   : > { %v765_v45 = vrot.slane %v764_v20, 1  ;;  %v777_v3 = vrot.slane %v776_v25, 2  ;;  %v789_v61 = vrot.slane %v788_v62, 4  ;;  %v680_v63 = vpop.xlane.xlu0 %679  ;;  %v1020_v39 = vrot.slane %v1011_v23, %v3006_v10  ;;  %v2425_v35 = vpop.eup %2424 }
 0x1d9   : > { %v1016_v37 = vrot.slane %v1011_v23, %v2968_v38  ;;  %v2427_v43 = vpop.eup %2426  ;;  %v757_v34 = vmul.f32 %v2423_v27, %v3205_v18  ;;  %v845_v1 = vrot.slane %v844_v5, 4  ;;  %v876_v53 = vmul.f32 0.25, %v787_v54 }
 0x1da   : > { %v766_v40 = vadd.f32 %v765_v45, %v764_v20  ;;  %v778_v30 = vadd.f32 %v777_v3, %v776_v25  ;;  %v790_v13 = vadd.f32 %v789_v61, %v788_v62  ;;  %v2429_v0 = vpop.eup %2428  ;;  %v3220_v20 = vsub.f32 %v3139_v50, %v1020_v39 }
 0x1db   : > { %v2431_v47 = vpop.eup %2430  ;;  %v748_v25 = vmul.f32 %v2425_v35, %v680_v63  ;;  %v3224_v6 = vsub.f32 %v3137_v49, %v1016_v37  ;;  %v833_v48 = vrot.slane %v832_v29, 2  ;;  %v858_v62 = vsel %vm759_vm4, %v757_v34, 0.0 }
 0x1dc   : > { %v873_v51 = vmul.f32 0.25, %v766_v40  ;;  %v779_v33 = vrot.slane %v778_v30, 1  ;;  %v791_v55 = vrot.slane %v790_v13, 2  ;;  %v686_v56 = vpop.xlane.xlu0 %685  ;;  %v808_v61 = vadd.f32 %v807_v15, %v806_v60  ;;  %v2433_v39 = vpop.eup %2432 }
 0x1dd   : > { %v750_v31 = vmul.f32 %v2427_v43, %v686_v56  ;;  %v795_v14 = vsel %vm759_vm4, %v748_v25, 0.0  ;;  %v846_v63 = vadd.f32 %v845_v1, %v844_v5  ;;  %v1026_v28 = vmul.f32 %v3220_v20, %v3220_v20  ;;  %v2435_v37 = vpop.eup %2434 }
 0x1de   : > { %v906_v23 = vsel %vm473_vm2, %v874_v44, %v873_v51  ;;  %v780_v58 = vadd.f32 %v779_v33, %v778_v30  ;;  %v792_v18 = vadd.f32 %v791_v55, %v790_v13  ;;  %v796_v45 = vrot.slane %v795_v14, 4 }
 0x1df   : > { %924 = vst.msk [vmem:[%s3226_s20] sm:$0x3] %vm425_vm0, %v906_v23  ;;  %v809_v3 = vsel %vm759_vm4, %v750_v31, 0.0  ;;  %v821_v35 = vrot.slane %v820_v57, 1  ;;  %v1025_v13 = vmul.f32 %v3224_v6, %v3224_v6  ;;  %v859_v43 = vrot.slane %v858_v62, 4  ;;  %1033 = vperm.xlu0 %2395, %v1026_v28  }
 0x1e0   : > { %v875_v50 = vmul.f32 0.25, %v780_v58  ;;  %v692_v49 = vpop.xlane.xlu0 %691  ;;  %v810_v27 = vrot.slane %v809_v3, 4  ;;  %v797_v30 = vadd.f32 %v796_v45, %v795_v14  ;;  %v793_v44 = vrot.slane %v792_v18, 1 }
 0x1e1   : > { %v752_v1 = vmul.f32 %v2429_v0, %v692_v49  ;;  %v834_v60 = vadd.f32 %v833_v48, %v832_v29  ;;  %1030 = vperm.xlu1 %2394, %v1025_v13   ;;  %v1190_v51 = vrot.slane %v3199_v52, %v2972_v42  ;;  %v1204_v33 = vrot.slane %v3199_v52, %v2977_v46 }
 0x1e2   : > { %v907_v40 = vsel %vm473_vm2, %v876_v53, %v875_v50  ;;  %v811_v54 = vadd.f32 %v810_v27, %v809_v3  ;;  %v798_v5 = vrot.slane %v797_v30, 2  ;;  %v847_v34 = vrot.slane %v846_v63, 2 }
 0x1e3   : > { %925 = vst.msk [vmem:[%s3226_s20 + $0x2] sm:$0x3] %vm425_vm0, %v907_v40  ;;  %v823_v56 = vsel %vm759_vm4, %v752_v1, 0.0  ;;  %v879_v23 = vmul.f32 0.25, %v808_v61  ;;  %v822_v58 = vadd.f32 %v821_v35, %v820_v57  ;;  %v860_v0 = vadd.f32 %v859_v43, %v858_v62 }
 0x1e4   : > { %v698_v15 = vpop.xlane.xlu0 %697  ;;  %v812_v55 = vrot.slane %v811_v54, 2  ;;  %v799_v31 = vadd.f32 %v798_v5, %v797_v30  ;;  %v824_v53 = vrot.slane %v823_v56, 4  ;;  %v794_v29 = vadd.f32 %v793_v44, %v792_v18 }
 0x1e5   : > { %v754_v25 = vmul.f32 %v2431_v47, %v698_v15  ;;  %1164 = vbcast.lane.b32.xlu1 %v1162_v59, 256  ;;  %v1155_v47 = vrot.slane %v3199_v52, %v2968_v38  ;;  %v835_v61 = vrot.slane %v834_v60, 1  ;;  %v848_v57 = vadd.f32 %v847_v34, %v846_v63 }
 0x1e6   : > { %v813_v48 = vadd.f32 %v812_v55, %v811_v54  ;;  %v800_v50 = vrot.slane %v799_v31, 1  ;;  %v825_v45 = vadd.f32 %v824_v53, %v823_v56  ;;  %v1169_v40 = vrot.slane %v3199_v52, %v3013_v16 }
 0x1e7   : > { %v837_v14 = vsel %vm759_vm4, %v754_v25, 0.0  ;;  %1157 = vbcast.lane.b32.xlu0 %v1155_v47, 256  ;;  %v861_v30 = vrot.slane %v860_v0, 2  ;;  %v877_v13 = vmul.f32 0.25, %v794_v29  ;;  %v836_v15 = vadd.f32 %v835_v61, %v834_v60  ;;  %v1090_v47 = vld [vmem:[%s3739_s6 + $0x10] sm:$0xff] }
 0x1e8   : > { %v838_v3 = vrot.slane %v837_v14, 4  ;;  %v704_v49 = vpop.xlane.xlu0 %703  ;;  %v814_v27 = vrot.slane %v813_v48, 1  ;;  %v801_v62 = vadd.f32 %v800_v50, %v799_v31  ;;  %v826_v18 = vrot.slane %v825_v45, 2 }
 0x1e9   : > { %v756_v28 = vmul.f32 %v2433_v39, %v704_v49  ;;  %v3763_v39 = vrot.slane %v3199_v52, %v3017_v19  ;;  %v1183_v56 = vrot.slane %v3199_v52, %v3021_v21  ;;  %v881_v61 = vmul.f32 0.25, %v822_v58 }
 0x1ea   : > { %v839_v35 = vadd.f32 %v838_v3, %v837_v14  ;;  %v815_v43 = vadd.f32 %v814_v27, %v813_v48  ;;  %v878_v59 = vmul.f32 0.25, %v801_v62  ;;  %v827_v54 = vadd.f32 %v826_v18, %v825_v45 }
 0x1eb   : > { %v851_v44 = vsel %vm759_vm4, %v756_v28, 0.0  ;;  %1178 = vbcast.lane.b32.xlu1 %v3763_v39, 256  ;;  %1171 = vbcast.lane.b32.xlu0 %v1169_v40, 256  ;;  %v849_v48 = vrot.slane %v848_v57, 1  ;;  %v862_v14 = vadd.f32 %v861_v30, %v860_v0  ;;  %v1197_v0 = vrot.slane %v3199_v52, %v3025_v24 }
 0x1ec   : > { %v840_v1 = vrot.slane %v839_v35, 2  ;;  %v852_v5 = vrot.slane %v851_v44, 4  ;;  %v710_v63 = vpop.xlane.xlu0 %709  ;;  %v880_v34 = vmul.f32 0.25, %v815_v43  ;;  %v908_v25 = vsel %vm473_vm2, %v878_v59, %v877_v13 }
 0x1ed   : > { %v758_v55 = vmul.f32 %v2435_v37, %v710_v63  ;;  %v828_v31 = vrot.slane %v827_v54, 1  ;;  %926 = vst.msk [vmem:[%s3226_s20 + $0x4] sm:$0x3] %vm425_vm0, %v908_v25  ;;  %v883_v18 = vmul.f32 0.25, %v836_v15  ;;  %v863_v40 = vrot.slane %v862_v14, 1 }
 0x1ee   : > { %v841_v53 = vadd.f32 %v840_v1, %v839_v35  ;;  %v853_v29 = vadd.f32 %v852_v5, %v851_v44  ;;  %v909_v50 = vsel %vm473_vm2, %v880_v34, %v879_v23  ;;  %v850_v35 = vadd.f32 %v849_v48, %v848_v57  ;;  %v1091_v48 = vld [vmem:[%s3739_s6 + $0x18] sm:$0xff] }
 0x1ef   : > { %v865_v45 = vsel %vm759_vm4, %v758_v55, 0.0  ;;  %927 = vst.msk [vmem:[%s3226_s20 + $0x6] sm:$0x3] %vm425_vm0, %v909_v50  ;;  %v829_v37 = vadd.f32 %v828_v31, %v827_v54  ;;  %1192 = vbcast.lane.b32.xlu1 %v1190_v51, 256  ;;  %1185 = vbcast.lane.b32.xlu0 %v1183_v56, 256  ;;  %v1218_v51 = vrot.slane %v1090_v47, %v3006_v10 }
 0x1f0   : > { %v842_v60 = vrot.slane %v841_v53, 1  ;;  %v854_v3 = vrot.slane %v853_v29, 2  ;;  %v866_v49 = vrot.slane %v865_v45, 4  ;;  %v1211_v57 = vrot.slane %v1090_v47, %v2968_v38 }
 0x1f1   : > { %v882_v27 = vmul.f32 0.25, %v829_v37  ;;  %v1232_v1 = vrot.slane %v1090_v47, %v3017_v19  ;;  %v885_v5 = vmul.f32 0.25, %v850_v35  ;;  %v864_v63 = vadd.f32 %v863_v40, %v862_v14 }
 0x1f2   : > { %v843_v23 = vadd.f32 %v842_v60, %v841_v53  ;;  %v855_v28 = vadd.f32 %v854_v3, %v853_v29  ;;  %v867_v62 = vadd.f32 %v866_v49, %v865_v45  ;;  %v1225_v34 = vrot.slane %v1090_v47, %v3013_v16 }
 0x1f3   : > { %v910_v30 = vsel %vm473_vm2, %v882_v27, %v881_v61  ;;  %1206 = vbcast.lane.b32.xlu1 %v1204_v33, 256  ;;  %1199 = vbcast.lane.b32.xlu0 %v1197_v0, 256  ;;  %v887_v55 = vmul.f32 0.25, %v864_v63  ;;  %v1246_v25 = vrot.slane %v1090_v47, %v2972_v42  ;;  %v1239_v53 = vrot.slane %v1090_v47, %v3021_v21 }
 0x1f4   : > { %v884_v13 = vmul.f32 0.25, %v843_v23  ;;  %v856_v43 = vrot.slane %v855_v28, 1  ;;  %v868_v58 = vrot.slane %v867_v62, 2  ;;  %928 = vst.msk [vmem:[%s3226_s20 + $0x8] sm:$0x3] %vm425_vm0, %v910_v30  ;;  %v1260_v29 = vrot.slane %v1090_v47, %v2977_v46 }
 0x1f5   : > { %v1253_v14 = vrot.slane %v1090_v47, %v3025_v24  ;;  %v1274_v50 = vrot.slane %v1091_v48, %v3006_v10  ;;  %v1267_v45 = vrot.slane %v1091_v48, %v2968_v38  ;;  %v1288_v37 = vrot.slane %v1091_v48, %v3017_v19 }
 0x1f6   : > { %v911_v44 = vsel %vm473_vm2, %v884_v13, %v883_v18  ;;  %v857_v59 = vadd.f32 %v856_v43, %v855_v28  ;;  %v869_v54 = vadd.f32 %v868_v58, %v867_v62  ;;  %v1281_v60 = vrot.slane %v1091_v48, %v3013_v16 }
 0x1f7   : > { %929 = vst.msk [vmem:[%s3226_s20 + $0xa] sm:$0x3] %vm425_vm0, %v911_v44  ;;  %1220 = vbcast.lane.b32.xlu1 %v1218_v51, 256  ;;  %1213 = vbcast.lane.b32.xlu0 %v1211_v57, 256  ;;  %v1302_v3 = vrot.slane %v1091_v48, %v2972_v42  ;;  %v1295_v49 = vrot.slane %v1091_v48, %v3021_v21 }
 0x1f8   : > { %v886_v39 = vmul.f32 0.25, %v857_v59  ;;  %v870_v52 = vrot.slane %v869_v54, 1  ;;  %v1316_v47 = vrot.slane %v1091_v48, %v2977_v46  ;;  %v1309_v61 = vrot.slane %v1091_v48, %v3025_v24 }
 0x1fa   : > { %v912_v33 = vsel %vm473_vm2, %v886_v39, %v885_v5  ;;  %v871_v15 = vadd.f32 %v870_v52, %v869_v54 }
 0x1fb   : > { %930 = vst.msk [vmem:[%s3226_s20 + $0xc] sm:$0x3] %vm425_vm0, %v912_v33  ;;  %1234 = vbcast.lane.b32.xlu1 %v1232_v1, 256  ;;  %1227 = vbcast.lane.b32.xlu0 %v1225_v34, 256 }
 0x1fc   : > { %v888_v56 = vmul.f32 0.25, %v871_v15 }
 0x1fe   : > { %v913_v31 = vsel %vm473_vm2, %v888_v56, %v887_v55 }
 0x1ff   : > { %931 = vst.msk [vmem:[%s3226_s20 + $0xe] sm:$0x3] %vm425_vm0, %v913_v31  ;;  %1248 = vbcast.lane.b32.xlu1 %v1246_v25, 256  ;;  %1241 = vbcast.lane.b32.xlu0 %v1239_v53, 256 }
 0x203   : > { %1262 = vbcast.lane.b32.xlu1 %v1260_v29, 256  ;;  %1255 = vbcast.lane.b32.xlu0 %v1253_v14, 256 }
 0x207   : > { %1276 = vbcast.lane.b32.xlu1 %v1274_v50, 256  ;;  %1269 = vbcast.lane.b32.xlu0 %v1267_v45, 256 }
 0x20b   : > { %1290 = vbcast.lane.b32.xlu1 %v1288_v37, 256  ;;  %1283 = vbcast.lane.b32.xlu0 %v1281_v60, 256 }
 0x20f   : > { %1304 = vbcast.lane.b32.xlu1 %v1302_v3, 256  ;;  %1297 = vbcast.lane.b32.xlu0 %v1295_v49, 256 }
 0x213   : > { %1318 = vbcast.lane.b32.xlu1 %v1316_v47, 256  ;;  %1311 = vbcast.lane.b32.xlu0 %v1309_v61, 256 }
 0x25e   : > { %v1034_v0 = vpop.permute.xlu0 %1033 }
 0x25f   : > { %v1042_v19 = vrot.slane %v1034_v0, %v3135_v2 }
 0x260   : > { %v1031_v27 = vpop.permute.xlu1 %1030 }
 0x261   : > { %v1038_v16 = vrot.slane %v1031_v27, %v3135_v2 }
 0x262   : > { %v3338_v52 = vpop.permute.xlu0 %1157 }
 0x263   : > { %v1043_v23 = vsel %vm473_vm2, %v1042_v19, %v1038_v16 }
 0x264   : > { %v1045_v42 = vsel %vm1007_vm3, %v1043_v23, 0.0  ;;  %v3309_v21 = vpop.permute.xlu1 %1164 }
 0x265   : > { %1046 = vadd.xlane.f32.xlu1 %v1045_v42 }
 0x266   : > { %v3350_v55 = vpop.permute.xlu0 %1171 }
 0x268   : > { %v3311_v28 = vpop.permute.xlu1 %1178 }
 0x26a   : > { %v3362_v31 = vpop.permute.xlu0 %1185 }
 0x26c   : > { %v3313_v46 = vpop.permute.xlu1 %1192 }
 0x26e   : > { %v3375_v50 = vpop.permute.xlu0 %1199 }
 0x270   : > { %v3315_v24 = vpop.permute.xlu1 %1206 }
 0x272   : > { %v1214_v60 = vpop.permute.xlu0 %1213 }
 0x274   : > { %v3317_v62 = vpop.permute.xlu1 %1220 }
 0x276   : > { %v1228_v0 = vpop.permute.xlu0 %1227 }
 0x278   : > { %v3319_v18 = vpop.permute.xlu1 %1234 }
 0x27a   : > { %v1242_v23 = vpop.permute.xlu0 %1241 }
 0x27c   : > { %v3321_v35 = vpop.permute.xlu1 %1248 }
 0x280   : > { %v3323_v40 = vpop.permute.xlu1 %1262 }
 0x284   : > { %v3325_v51 = vpop.permute.xlu1 %1276 }
 0x288   : > { %v3327_v30 = vpop.permute.xlu1 %1290 }
 0x28c   : > { %v3329_v13 = vpop.permute.xlu1 %1304 }
 0x290   : > { %v1319_v43 = vpop.permute.xlu1 %1318 }
 0x2f2   : > { %v1047_v58 = vpop.xlane.xlu1 %1046 }
 0x2f3   : > { %v1048_v44 = vmul.f32 0.25, %v1047_v58 }
 0x2f5   : > { %v1049_v59 = vadd.f32 1e-05, %v1048_v44  ;;  %v3398_v44 = vpop.permute.xlu0 %1255 }
 0x2f7   : > { %2436 = vrsqrt.f32 %v1049_v59 }
 0x301   : > { %v2437_v54 = vpop.eup %2436 }
 0x302   : > { %v1055_v57 = vrot.slane %v2437_v54, %v2968_v38  ;;  %v1059_v5 = vrot.slane %v2437_v54, %v3006_v10 }
 0x304   : > { %v1062_v1 = vmul.f32 %v1055_v57, %v3224_v6  ;;  %v1063_v33 = vmul.f32 %v1059_v5, %v3220_v20 }
 0x306   : > { %v1074_v63 = vmul.f32 %v3171_v8, %v1062_v1  ;;  %v1075_v38 = vmul.f32 %v3171_v8, %v1063_v33  ;;  %v1270_v1 = vpop.permute.xlu0 %1269 }
 0x308   : > { %v3336_v39 = vadd.f32 %v3175_v41, %v1074_v63  ;;  %v3356_v56 = vadd.f32 %v3175_v41, %v1075_v38 }
 0x30a   : > { %v1352_v15 = vmul.f32 %v3169_v32, %v3336_v39  ;;  %v1353_v34 = vmul.f32 %v3179_v11, %v3336_v39  ;;  %v1355_v10 = vmul.f32 %v3183_v17, %v3336_v39  ;;  %v1354_v6 = vmul.f32 %v3181_v12, %v3336_v39 }
 0x30b   : > { %v3353_v20 = vmul.f32 %v1319_v43, %v3336_v39  ;;  %v1357_v25 = vmul.f32 %v3173_v7, %v3336_v39  ;;  %v1356_v8 = vmul.f32 %v3185_v22, %v3336_v39  ;;  %v1359_v53 = vmul.f32 %v3177_v9, %v3336_v39 }
 0x30c   : > { %1484 = vperm.xlu1 %2394, %v1353_v34   ;;  %1481 = vperm.xlu0 %2395, %v1352_v15   ;;  %v3367_v29 = vmul.f32 %v1319_v43, %v3356_v56  ;;  %v1358_v41 = vmul.f32 %v3187_v26, %v3336_v39  ;;  %v1361_v48 = vmul.f32 %v3309_v21, %v3336_v39 }
 0x30d   : > { %v1360_v14 = vmul.f32 %v3338_v52, %v3336_v39  ;;  %v1363_v45 = vmul.f32 %v3311_v28, %v3336_v39  ;;  %v1362_v37 = vmul.f32 %v3350_v55, %v3336_v39  ;;  %v1365_v3 = vmul.f32 %v3313_v46, %v3336_v39 }
 0x30e   : > { %v1364_v49 = vmul.f32 %v3362_v31, %v3336_v39  ;;  %v1367_v47 = vmul.f32 %v3315_v24, %v3336_v39  ;;  %v1366_v61 = vmul.f32 %v3375_v50, %v3336_v39  ;;  %v1369_v19 = vmul.f32 %v3317_v62, %v3336_v39 }
 0x30f   : > { %v1368_v27 = vmul.f32 %v1214_v60, %v3336_v39  ;;  %v1371_v16 = vmul.f32 %v3319_v18, %v3336_v39  ;;  %v1370_v42 = vmul.f32 %v1228_v0, %v3336_v39  ;;  %v1373_v43 = vmul.f32 %v3321_v35, %v3336_v39 }
 0x310   : > { %1490 = vperm.xlu1 %2394, %v1355_v10   ;;  %1487 = vperm.xlu0 %2395, %v1354_v6   ;;  %v1372_v58 = vmul.f32 %v1242_v23, %v3336_v39  ;;  %v1375_v59 = vmul.f32 %v3323_v40, %v3336_v39  ;;  %v1374_v54 = vmul.f32 %v3398_v44, %v3336_v39 }
 0x311   : > { %v1377_v57 = vmul.f32 %v3325_v51, %v3336_v39  ;;  %v1376_v5 = vmul.f32 %v1270_v1, %v3336_v39  ;;  %v1385_v63 = vmul.f32 %v3179_v11, %v3356_v56  ;;  %v1384_v33 = vmul.f32 %v3169_v32, %v3356_v56 }
 0x312   : > { %v1393_v15 = vmul.f32 %v3309_v21, %v3356_v56  ;;  %v1392_v34 = vmul.f32 %v3338_v52, %v3356_v56  ;;  %v1394_v38 = vmul.f32 %v3350_v55, %v3356_v56  ;;  %v1386_v10 = vmul.f32 %v3181_v12, %v3356_v56  ;;  %v1284_v55 = vpop.permute.xlu0 %1283 }
 0x313   : > { %v1401_v32 = vmul.f32 %v3317_v62, %v3356_v56  ;;  %v1400_v11 = vmul.f32 %v1214_v60, %v3356_v56  ;;  %v1395_v21 = vmul.f32 %v3311_v28, %v3356_v56  ;;  %v1387_v52 = vmul.f32 %v3183_v17, %v3356_v56 }
 0x314   : > { %1496 = vperm.xlu1 %2394, %v1357_v25   ;;  %1493 = vperm.xlu0 %2395, %v1356_v8   ;;  %v1408_v6 = vmul.f32 %v1270_v1, %v3356_v56  ;;  %v1402_v12 = vmul.f32 %v1228_v0, %v3356_v56  ;;  %v1378_v62 = vmul.f32 %v1284_v55, %v3336_v39 }
 0x315   : > { %v1409_v25 = vmul.f32 %v3325_v51, %v3356_v56  ;;  %v1396_v28 = vmul.f32 %v3362_v31, %v3356_v56  ;;  %v1388_v17 = vmul.f32 %v3185_v22, %v3356_v56  ;;  %v1410_v8 = vmul.f32 %v1284_v55, %v3356_v56 }
 0x316   : > { %v1389_v51 = vmul.f32 %v3173_v7, %v3356_v56  ;;  %v1404_v31 = vmul.f32 %v1242_v23, %v3356_v56  ;;  %v1397_v22 = vmul.f32 %v3313_v46, %v3356_v56  ;;  %v1398_v7 = vmul.f32 %v3375_v50, %v3356_v56 }
 0x317   : > { %v1381_v60 = vmul.f32 %v3329_v13, %v3336_v39  ;;  %v1399_v50 = vmul.f32 %v3315_v24, %v3356_v56 }
 0x318   : > { %1502 = vperm.xlu1 %2394, %v1359_v53   ;;  %1499 = vperm.xlu0 %2395, %v1358_v41   ;;  %v1403_v53 = vmul.f32 %v3319_v18, %v3356_v56  ;;  %v1379_v41 = vmul.f32 %v3327_v30, %v3336_v39 }
 0x31c   : > { %1508 = vperm.xlu1 %2394, %v1361_v48   ;;  %1505 = vperm.xlu0 %2395, %v1360_v14   ;;  %v1298_v48 = vpop.permute.xlu0 %1297  ;;  %v1411_v14 = vmul.f32 %v3327_v30, %v3356_v56  ;;  %v1391_v30 = vmul.f32 %v3177_v9, %v3356_v56 }
 0x31d   : > { %v1380_v18 = vmul.f32 %v1298_v48, %v3336_v39  ;;  %v1412_v46 = vmul.f32 %v1298_v48, %v3356_v56 }
 0x320   : > { %1514 = vperm.xlu1 %2394, %v1363_v45   ;;  %1511 = vperm.xlu0 %2395, %v1362_v37   ;;  %v1390_v45 = vmul.f32 %v3187_v26, %v3356_v56  ;;  %v1405_v37 = vmul.f32 %v3321_v35, %v3356_v56  ;;  %v1406_v26 = vmul.f32 %v3398_v44, %v3356_v56 }
 0x324   : > { %1520 = vperm.xlu1 %2394, %v1365_v3   ;;  %1517 = vperm.xlu0 %2395, %v1364_v49   ;;  %v1312_v3 = vpop.permute.xlu0 %1311  ;;  %v1413_v49 = vmul.f32 %v3329_v13, %v3356_v56 }
 0x325   : > { %v1382_v35 = vmul.f32 %v1312_v3, %v3336_v39  ;;  %v1414_v9 = vmul.f32 %v1312_v3, %v3356_v56 }
 0x328   : > { %1526 = vperm.xlu1 %2394, %v1367_v47   ;;  %1523 = vperm.xlu0 %2395, %v1366_v61   ;;  %v1407_v47 = vmul.f32 %v3323_v40, %v3356_v56 }
 0x32c   : > { %1532 = vperm.xlu1 %2394, %v1369_v19   ;;  %1529 = vperm.xlu0 %2395, %v1368_v27  }
 0x330   : > { %1538 = vperm.xlu1 %2394, %v1371_v16   ;;  %1535 = vperm.xlu0 %2395, %v1370_v42  }
 0x334   : > { %1544 = vperm.xlu1 %2394, %v1373_v43   ;;  %1541 = vperm.xlu0 %2395, %v1372_v58  }
 0x338   : > { %1550 = vperm.xlu1 %2394, %v1375_v59   ;;  %1547 = vperm.xlu0 %2395, %v1374_v54  }
 0x33c   : > { %1556 = vperm.xlu1 %2394, %v1377_v57   ;;  %1553 = vperm.xlu0 %2395, %v1376_v5  }
 0x340   : > { %1580 = vperm.xlu1 %2394, %v1385_v63   ;;  %1577 = vperm.xlu0 %2395, %v1384_v33  }
 0x344   : > { %1604 = vperm.xlu1 %2394, %v1393_v15   ;;  %1601 = vperm.xlu0 %2395, %v1392_v34  }
 0x348   : > { %1607 = vperm.xlu1 %2394, %v1394_v38   ;;  %1583 = vperm.xlu0 %2395, %v1386_v10  }
 0x34c   : > { %1628 = vperm.xlu1 %2394, %v1401_v32   ;;  %1625 = vperm.xlu0 %2395, %v1400_v11  }
 0x350   : > { %1610 = vperm.xlu1 %2394, %v1395_v21   ;;  %1586 = vperm.xlu0 %2395, %v1387_v52  }
 0x354   : > { %1649 = vperm.xlu1 %2394, %v1408_v6   ;;  %1631 = vperm.xlu0 %2395, %v1402_v12  }
 0x358   : > { %1559 = vperm.xlu1 %2394, %v1378_v62   ;;  %1652 = vperm.xlu0 %2395, %v1409_v25  }
 0x35c   : > { %1613 = vperm.xlu1 %2394, %v1396_v28   ;;  %1589 = vperm.xlu0 %2395, %v1388_v17  }
 0x360   : > { %1655 = vperm.xlu1 %2394, %v1410_v8   ;;  %1634 = vperm.xlu0 %2395, %v1403_v53  }
 0x364   : > { %1592 = vperm.xlu1 %2394, %v1389_v51   ;;  %1562 = vperm.xlu0 %2395, %v1379_v41  }
 0x368   : > { %1637 = vperm.xlu1 %2394, %v1404_v31   ;;  %1616 = vperm.xlu0 %2395, %v1397_v22  }
 0x36c   : > { %1565 = vperm.xlu1 %2394, %v1380_v18   ;;  %1658 = vperm.xlu0 %2395, %v1411_v14  }
 0x370   : > { %1619 = vperm.xlu1 %2394, %v1398_v7   ;;  %1595 = vperm.xlu0 %2395, %v1390_v45  }
 0x374   : > { %1661 = vperm.xlu1 %2394, %v1412_v46   ;;  %1640 = vperm.xlu0 %2395, %v1405_v37  }
 0x378   : > { %1598 = vperm.xlu1 %2394, %v1391_v30   ;;  %1568 = vperm.xlu0 %2395, %v1381_v60  }
 0x37c   : > { %1643 = vperm.xlu1 %2394, %v1406_v26   ;;  %1622 = vperm.xlu0 %2395, %v1399_v50  }
 0x380   : > { %1571 = vperm.xlu1 %2394, %v1382_v35   ;;  %1664 = vperm.xlu0 %2395, %v1413_v49  }
 0x384   : > { %1667 = vperm.xlu1 %2394, %v1414_v9   ;;  %1646 = vperm.xlu0 %2395, %v1407_v47  }
 0x388   : > { %1670 = vperm.xlu1 %2394, %v3367_v29   ;;  %1574 = vperm.xlu0 %2395, %v3353_v20  }
 0x38b   : > { %v1485_v24 = vpop.permute.xlu1 %1484  ;;  %v1482_v61 = vpop.permute.xlu0 %1481 }
 0x38c   : > { %v1679_v13 = vrot.slane %v1485_v24, %v3135_v2  ;;  %v1675_v27 = vrot.slane %v1482_v61, %v3135_v2 }
 0x38e   : > { %v1928_v56 = vsel %vm473_vm2, %v1679_v13, %v1675_v27 }
 0x38f   : > { %v1491_v0 = vpop.permute.xlu1 %1490  ;;  %v1488_v39 = vpop.permute.xlu0 %1487 }
 0x390   : > { %v1683_v23 = vrot.slane %v1488_v39, %v3135_v2  ;;  %v1687_v29 = vrot.slane %v1491_v0, %v3135_v2 }
 0x392   : > { %v1930_v20 = vsel %vm1929_vm5, %v1683_v23, %v1928_v56 }
 0x393   : > { %v1497_v19 = vpop.permute.xlu1 %1496  ;;  %v1494_v16 = vpop.permute.xlu0 %1493  ;;  %v1932_v59 = vsel %vm1931_vm6, %v1687_v29, %v1930_v20 }
 0x394   : > { %v1691_v43 = vrot.slane %v1494_v16, %v3135_v2  ;;  %v1695_v44 = vrot.slane %v1497_v19, %v3135_v2 }
 0x396   : > { %v1934_v57 = vsel %vm1933_vm7, %v1691_v43, %v1932_v59 }
 0x397   : > { %v1503_v40 = vpop.permute.xlu1 %1502  ;;  %v1500_v42 = vpop.permute.xlu0 %1499  ;;  %v1936_v38 = vsel %vm1935_vm8, %v1695_v44, %v1934_v57 }
 0x398   : > { %v1699_v1 = vrot.slane %v1500_v42, %v3135_v2  ;;  %v1703_v15 = vrot.slane %v1503_v40, %v3135_v2 }
 0x39a   : > { %v1938_v32 = vsel %vm1937_vm9, %v1699_v1, %v1936_v38 }
 0x39b   : > { %v1509_v58 = vpop.permute.xlu1 %1508  ;;  %v1506_v54 = vpop.permute.xlu0 %1505  ;;  %v1940_v55 = vsel %vm1939_vm10, %v1703_v15, %v1938_v32 }
 0x39c   : > { %v1711_v5 = vrot.slane %v1509_v58, %v3135_v2  ;;  %v1707_v63 = vrot.slane %v1506_v54, %v3135_v2  ;;  %v1999_v53 = vsel %vm1998_vm11, %v1940_v55, 0.0 }
 0x39e   : > { %v1941_v11 = vsel %vm473_vm2, %v1711_v5, %v1707_v63 }
 0x39f   : > { %v1515_v33 = vpop.permute.xlu1 %1514  ;;  %v1512_v34 = vpop.permute.xlu0 %1511 }
 0x3a0   : > { %v1715_v10 = vrot.slane %v1512_v34, %v3135_v2  ;;  %v1719_v21 = vrot.slane %v1515_v33, %v3135_v2 }
 0x3a2   : > { %v1942_v52 = vsel %vm1929_vm5, %v1715_v10, %v1941_v11 }
 0x3a3   : > { %v1521_v6 = vpop.permute.xlu1 %1520  ;;  %v1518_v12 = vpop.permute.xlu0 %1517  ;;  %v1943_v28 = vsel %vm1931_vm6, %v1719_v21, %v1942_v52 }
 0x3a4   : > { %v1723_v62 = vrot.slane %v1518_v12, %v3135_v2  ;;  %v1727_v25 = vrot.slane %v1521_v6, %v3135_v2 }
 0x3a6   : > { %v1944_v17 = vsel %vm1933_vm7, %v1723_v62, %v1943_v28 }
 0x3a7   : > { %v1527_v8 = vpop.permute.xlu1 %1526  ;;  %2000 = vadd.xlane.f32.xlu0 %v1999_v53  ;;  %v1524_v41 = vpop.permute.xlu0 %1523  ;;  %v1945_v22 = vsel %vm1935_vm8, %v1727_v25, %v1944_v17 }
 0x3a8   : > { %v1735_v51 = vrot.slane %v1527_v8, %v3135_v2  ;;  %v1731_v31 = vrot.slane %v1524_v41, %v3135_v2 }
 0x3aa   : > { %v1946_v18 = vsel %vm1937_vm9, %v1731_v31, %v1945_v22 }
 0x3ab   : > { %v1533_v48 = vpop.permute.xlu1 %1532  ;;  %v1530_v14 = vpop.permute.xlu0 %1529  ;;  %v1947_v7 = vsel %vm1939_vm10, %v1735_v51, %v1946_v18 }
 0x3ac   : > { %v2002_v45 = vsel %vm1998_vm11, %v1947_v7, 0.0  ;;  %v1743_v46 = vrot.slane %v1533_v48, %v3135_v2  ;;  %v1739_v37 = vrot.slane %v1530_v14, %v3135_v2 }
 0x3ad   : > { %2003 = vadd.xlane.f32.xlu1 %v2002_v45 }
 0x3ae   : > { %v1948_v50 = vsel %vm473_vm2, %v1743_v46, %v1739_v37 }
 0x3af   : > { %v1539_v30 = vpop.permute.xlu1 %1538  ;;  %v1536_v60 = vpop.permute.xlu0 %1535 }
 0x3b0   : > { %v1747_v26 = vrot.slane %v1536_v60, %v3135_v2  ;;  %v1751_v3 = vrot.slane %v1539_v30, %v3135_v2 }
 0x3b2   : > { %v1949_v35 = vsel %vm1929_vm5, %v1747_v26, %v1948_v50 }
 0x3b3   : > { %v1545_v49 = vpop.permute.xlu1 %1544  ;;  %v1542_v9 = vpop.permute.xlu0 %1541  ;;  %v1950_v61 = vsel %vm1931_vm6, %v1751_v3, %v1949_v35 }
 0x3b4   : > { %v1755_v47 = vrot.slane %v1542_v9, %v3135_v2  ;;  %v1759_v24 = vrot.slane %v1545_v49, %v3135_v2 }
 0x3b6   : > { %v1951_v0 = vsel %vm1933_vm7, %v1755_v47, %v1950_v61 }
 0x3b7   : > { %v1551_v39 = vpop.permute.xlu1 %1550  ;;  %v1548_v13 = vpop.permute.xlu0 %1547  ;;  %v1952_v16 = vsel %vm1935_vm8, %v1759_v24, %v1951_v0 }
 0x3b8   : > { %v1767_v19 = vrot.slane %v1551_v39, %v3135_v2  ;;  %v1763_v27 = vrot.slane %v1548_v13, %v3135_v2 }
 0x3ba   : > { %v1953_v40 = vsel %vm1937_vm9, %v1763_v27, %v1952_v16 }
 0x3bb   : > { %v1557_v23 = vpop.permute.xlu1 %1556  ;;  %v1554_v29 = vpop.permute.xlu0 %1553  ;;  %v1954_v42 = vsel %vm1939_vm10, %v1767_v19, %v1953_v40 }
 0x3bc   : > { %v1775_v56 = vrot.slane %v1557_v23, %v3135_v2  ;;  %v1771_v20 = vrot.slane %v1554_v29, %v3135_v2  ;;  %v2005_v43 = vsel %vm1998_vm11, %v1954_v42, 0.0 }
 0x3bd   : > { %2006 = vadd.xlane.f32.xlu1 %v2005_v43 }
 0x3be   : > { %v3522_v58 = vsel %vm473_vm2, %v1775_v56, %v1771_v20 }
 0x3bf   : > { %v1581_v44 = vpop.permute.xlu1 %1580  ;;  %v1578_v59 = vpop.permute.xlu0 %1577 }
 0x3c0   : > { %v1807_v51 = vrot.slane %v1581_v44, %v3135_v2  ;;  %v1803_v41 = vrot.slane %v1578_v59, %v3135_v2 }
 0x3c2   : > { %v1962_v7 = vsel %vm473_vm2, %v1807_v51, %v1803_v41 }
 0x3c3   : > { %v1605_v54 = vpop.permute.xlu1 %1604  ;;  %v1602_v57 = vpop.permute.xlu0 %1601 }
 0x3c4   : > { %v1839_v37 = vrot.slane %v1605_v54, %v3135_v2  ;;  %v1835_v30 = vrot.slane %v1602_v57, %v3135_v2 }
 0x3c6   : > { %v1969_v39 = vsel %vm473_vm2, %v1839_v37, %v1835_v30 }
 0x3c7   : > { %v1608_v1 = vpop.permute.xlu1 %1607  ;;  %v1584_v5 = vpop.permute.xlu0 %1583 }
 0x3c8   : > { %v1811_v22 = vrot.slane %v1584_v5, %v3135_v2  ;;  %v1843_v50 = vrot.slane %v1608_v1, %v3135_v2 }
 0x3ca   : > { %v1963_v60 = vsel %vm1929_vm5, %v1811_v22, %v1962_v7  ;;  %v1970_v27 = vsel %vm1929_vm5, %v1843_v50, %v1969_v39 }
 0x3cb   : > { %v3524_v63 = vpop.permute.xlu1 %1628  ;;  %v3526_v33 = vpop.permute.xlu0 %1625 }
 0x3cc   : > { %v1871_v43 = vrot.slane %v3524_v63, %v3135_v2  ;;  %v1867_v44 = vrot.slane %v3526_v33, %v3135_v2 }
 0x3cf   : > { %v1611_v15 = vpop.permute.xlu1 %1610  ;;  %v1587_v34 = vpop.permute.xlu0 %1586 }
 0x3d0   : > { %v1815_v48 = vrot.slane %v1587_v34, %v3135_v2  ;;  %v1847_v35 = vrot.slane %v1611_v15, %v3135_v2 }
 0x3d2   : > { %v1964_v3 = vsel %vm1931_vm6, %v1815_v48, %v1963_v60  ;;  %v1971_v40 = vsel %vm1931_vm6, %v1847_v35, %v1970_v27 }
 0x3d3   : > { %v3528_v38 = vpop.permute.xlu1 %1649  ;;  %v3530_v10 = vpop.permute.xlu0 %1631 }
 0x3d4   : > { %v1875_v57 = vrot.slane %v3530_v10, %v3135_v2 }
 0x3d7   : > { %v3532_v32 = vpop.permute.xlu1 %1559  ;;  %v3534_v11 = vpop.permute.xlu0 %1652 }
 0x3d8   : > { %v1903_v5 = vrot.slane %v3534_v11, %v3135_v2  ;;  %v1899_v11 = vrot.slane %v3528_v38, %v3135_v2 }
 0x3da   : > { %v1983_v51 = vsel %vm473_vm2, %v1903_v5, %v1899_v11  ;;  %v2067_v5 = vadd.s32 4294967272, %v3128_v4 }
 0x3db   : > { %v1614_v21 = vpop.permute.xlu1 %1613  ;;  %v1590_v52 = vpop.permute.xlu0 %1589 }
 0x3dc   : > { %v1819_v18 = vrot.slane %v1590_v52, %v3135_v2  ;;  %v1851_v47 = vrot.slane %v1614_v21, %v3135_v2  ;;  %v2070_v11 = vsub.s32 %v2067_v5, %v2961_v36 }
 0x3de   : > { %v1965_v49 = vsel %vm1933_vm7, %v1819_v18, %v1964_v3  ;;  %v1972_v42 = vsel %vm1933_vm7, %v1851_v47, %v1971_v40 }
 0x3df   : > { %v3536_v6 = vpop.permute.xlu1 %1655  ;;  %v3538_v12 = vpop.permute.xlu0 %1634 }
 0x3e0   : > { %v1879_v15 = vrot.slane %v3538_v12, %v3135_v2  ;;  %v1907_v33 = vrot.slane %v3536_v6, %v3135_v2 }
 0x3e2   : > { %v1984_v48 = vsel %vm1929_vm5, %v1907_v33, %v1983_v51 }
 0x3e3   : > { %v1593_v55 = vpop.permute.xlu1 %1592  ;;  %v3540_v62 = vpop.permute.xlu0 %1562 }
 0x3e4   : > { %v1823_v45 = vrot.slane %v1593_v55, %v3135_v2  ;;  %v1976_v55 = vsel %vm473_vm2, %v1871_v43, %v1867_v44  ;;  %v1783_v38 = vrot.slane %v3540_v62, %v3135_v2 }
 0x3e5   : > { %v1977_v12 = vsel %vm1929_vm5, %v1875_v57, %v1976_v55 }
 0x3e6   : > { %v1966_v24 = vsel %vm1935_vm8, %v1823_v45, %v1965_v49  ;;  %v1978_v41 = vsel %vm1931_vm6, %v1879_v15, %v1977_v12 }
 0x3e7   : > { %v3542_v25 = vpop.permute.xlu1 %1637  ;;  %v1617_v28 = vpop.permute.xlu0 %1616 }
 0x3e8   : > { %v1855_v19 = vrot.slane %v1617_v28, %v3135_v2  ;;  %v1883_v21 = vrot.slane %v3542_v25, %v3135_v2 }
 0x3ea   : > { %v1973_v59 = vsel %vm1935_vm8, %v1855_v19, %v1972_v42  ;;  %v2053_v42 = vadd.s32 4294967288, %v3128_v4 }
 0x3eb   : > { %v3544_v17 = vpop.permute.xlu1 %1565  ;;  %v3546_v8 = vpop.permute.xlu0 %1658 }
 0x3ec   : > { %v1911_v6 = vrot.slane %v3546_v8, %v3135_v2  ;;  %v1787_v8 = vrot.slane %v3544_v17, %v3135_v2 }
 0x3ee   : > { %v1985_v30 = vsel %vm1931_vm6, %v1911_v6, %v1984_v48 }
 0x3ef   : > { %v1620_v53 = vpop.permute.xlu1 %1619  ;;  %v1596_v31 = vpop.permute.xlu0 %1595 }
 0x3f0   : > { %v1827_v26 = vrot.slane %v1596_v31, %v3135_v2  ;;  %v1859_v16 = vrot.slane %v1620_v53, %v3135_v2  ;;  %v1779_v53 = vrot.slane %v3532_v32, %v3135_v2  ;;  %v1979_v32 = vsel %vm1933_vm7, %v1883_v21, %v1978_v41 }
 0x3f2   : > { %v1967_v13 = vsel %vm1937_vm9, %v1827_v26, %v1966_v24  ;;  %v1974_v1 = vsel %vm1937_vm9, %v1859_v16, %v1973_v59  ;;  %v1956_v37 = vsel %vm1929_vm5, %v1779_v53, %v3522_v58  ;;  %v2024_v59 = vstv %s2023_s23 }
 0x3f3   : > { %v3553_v14 = vpop.permute.xlu1 %1661  ;;  %v1641_v46 = vpop.permute.xlu0 %1640  ;;  %v1957_v26 = vsel %vm1931_vm6, %v1783_v38, %v1956_v37  ;;  %v2038_v37 = vld [vmem:[%s3226_s20 + $0xa] sm:$0x3] }
 0x3f4   : > { %v1887_v28 = vrot.slane %v1641_v46, %v3135_v2  ;;  %v1915_v31 = vrot.slane %v3553_v14, %v3135_v2  ;;  %v1958_v49 = vsel %vm1933_vm7, %v1787_v8, %v1957_v26 }
 0x3f6   : > { %v1980_v45 = vsel %vm1935_vm8, %v1887_v28, %v1979_v32  ;;  %v1986_v50 = vsel %vm1933_vm7, %v1915_v31, %v1985_v30 }
 0x3f7   : > { %v1599_v9 = vpop.permute.xlu1 %1598  ;;  %v3568_v0 = vpop.permute.xlu0 %1568 }
 0x3f8   : > { %v1831_v61 = vrot.slane %v1599_v9, %v3135_v2  ;;  %v1791_v46 = vrot.slane %v3568_v0, %v3135_v2 }
 0x3fa   : > { %v1968_v23 = vsel %vm1939_vm10, %v1831_v61, %v1967_v13  ;;  %v1959_v61 = vsel %vm1935_vm8, %v1791_v46, %v1958_v49  ;;  %v2035_v46 = vld [vmem:[%s3226_s20 + $0x4] sm:$0x3] }
 0x3fb   : > { %v1644_v56 = vpop.permute.xlu1 %1643  ;;  %v2011_v29 = vsel %vm1998_vm11, %v1968_v23, 0.0  ;;  %v1623_v20 = vpop.permute.xlu0 %1622 }
 0x3fc   : > { %2012 = vadd.xlane.f32.xlu0 %v2011_v29  ;;  %v1863_v54 = vrot.slane %v1623_v20, %v3135_v2  ;;  %v1891_v25 = vrot.slane %v1644_v56, %v3135_v2  ;;  %v2060_v20 = vadd.s32 4294967280, %v3128_v4 }
 0x3fe   : > { %v1975_v63 = vsel %vm1939_vm10, %v1863_v54, %v1974_v1  ;;  %v1981_v17 = vsel %vm1937_vm9, %v1891_v25, %v1980_v45  ;;  %v2056_v54 = vsub.s32 %v2053_v42, %v2961_v36  ;;  %v2063_v15 = vsub.s32 %v2060_v20, %v2961_v36  ;;  %v2034_v45 = vld [vmem:[%s3226_s20 + $0x2] sm:$0x3] }
 0x3ff   : > { %v1572_v34 = vpop.permute.xlu1 %1571  ;;  %v1665_v52 = vpop.permute.xlu0 %1664  ;;  %v2014_v10 = vsel %vm1998_vm11, %v1975_v63, 0.0 }
 0x400   : > { %2015 = vadd.xlane.f32.xlu0 %v2014_v10  ;;  %v1919_v18 = vrot.slane %v1665_v52, %v3135_v2  ;;  %v1795_v60 = vrot.slane %v1572_v34, %v3135_v2 }
 0x402   : > { %v1987_v9 = vsel %vm1935_vm8, %v1919_v18, %v1986_v50  ;;  %v1960_v13 = vsel %vm1937_vm9, %v1795_v60, %v1959_v61  ;;  %v2033_v18 = vld [vmem:[%s3226_s20] sm:$0x3]  ;;  %v2039_v50 = vld [vmem:[%s3226_s20 + $0xc] sm:$0x3] }
 0x403   : > { %v1668_v22 = vpop.permute.xlu1 %1667  ;;  %v1647_v7 = vpop.permute.xlu0 %1646 }
 0x404   : > { %v1923_v62 = vrot.slane %v1668_v22, %v3135_v2  ;;  %v1895_v14 = vrot.slane %v1647_v7, %v3135_v2 }
 0x406   : > { %v1982_v35 = vsel %vm1939_vm10, %v1895_v14, %v1981_v17  ;;  %v1988_v39 = vsel %vm1937_vm9, %v1923_v62, %v1987_v9  ;;  %v2036_v62 = vld [vmem:[%s3226_s20 + $0x6] sm:$0x3]  ;;  %v2037_v14 = vld [vmem:[%s3226_s20 + $0x8] sm:$0x3] }
 0x407   : > { %v1671_v3 = vpop.permute.xlu1 %1670  ;;  %v1575_v58 = vpop.permute.xlu0 %1574  ;;  %v2017_v24 = vsel %vm1998_vm11, %v1982_v35, 0.0 }
 0x408   : > { %v1927_v47 = vrot.slane %v1671_v3, %v3135_v2  ;;  %v1799_v0 = vrot.slane %v1575_v58, %v3135_v2  ;;  %2018 = vadd.xlane.f32.xlu0 %v2017_v24  ;;  %v2040_v3 = vld [vmem:[%s3226_s20 + $0xe] sm:$0x3] }
 0x40a   : > { %v1989_v19 = vsel %vm1939_vm10, %v1927_v47, %v1988_v39  ;;  %v1961_v16 = vsel %vm1939_vm10, %v1799_v0, %v1960_v13 }
 0x40b   : > { %v2020_v27 = vsel %vm1998_vm11, %v1989_v19, 0.0  ;;  %v2008_v23 = vsel %vm1998_vm11, %v1961_v16, 0.0 }
 0x40c   : > { %2021 = vadd.xlane.f32.xlu0 %v2020_v27  ;;  %2009 = vadd.xlane.f32.xlu1 %v2008_v23 }
 0x434   : > { %v2001_v40 = vpop.xlane.xlu0 %2000 }
 0x435   : > { %v2025_v33 = vadd.f32 %v2024_v59, %v2001_v40 }
 0x437   : > { %v2052_v4 = vrot.slane %v2025_v33, %v3135_v2 }
 0x43a   : > { %v2004_v29 = vpop.xlane.xlu1 %2003 }
 0x43b   : > { %v2026_v57 = vadd.f32 %v2024_v59, %v2004_v29 }
 0x43d   : > { %v2057_v10 = vrot.slane %v2026_v57, %v2056_v54 }
 0x43f   : > { %v2059_v36 = vsel %vm2058_vm12, %v2057_v10, %v2052_v4 }
 0x44a   : > { %v2007_v44 = vpop.xlane.xlu1 %2006 }
 0x44b   : > { %v2027_v34 = vadd.f32 %v2024_v59, %v2007_v44 }
 0x44d   : > { %v2064_v28 = vrot.slane %v2027_v34, %v2063_v15 }
 0x44f   : > { %v2066_v48 = vsel %vm2065_vm13, %v2064_v28, %v2059_v36 }
 0x489   : > { %v2013_v56 = vpop.xlane.xlu0 %2012 }
 0x48a   : > { %v2029_v21 = vadd.f32 %v2024_v59, %v2013_v56 }
 0x48c   : > { %v2077_v25 = vrot.slane %v2029_v21, %v3135_v2 }
 0x48d   : > { %v2016_v43 = vpop.xlane.xlu0 %2015 }
 0x48e   : > { %v2030_v1 = vadd.f32 %v2024_v59, %v2016_v43 }
 0x490   : > { %v2081_v55 = vrot.slane %v2030_v1, %v2056_v54 }
 0x492   : > { %v2082_v38 = vsel %vm2058_vm12, %v2081_v55, %v2077_v25 }
 0x495   : > { %v2019_v63 = vpop.xlane.xlu0 %2018 }
 0x496   : > { %v2031_v52 = vadd.f32 %v2024_v59, %v2019_v63 }
 0x498   : > { %v2086_v12 = vrot.slane %v2031_v52, %v2063_v15 }
 0x499   : > { %v2010_v53 = vpop.xlane.xlu1 %2009  ;;  %v2022_v6 = vpop.xlane.xlu0 %2021 }
 0x49a   : > { %v2028_v51 = vadd.f32 %v2024_v59, %v2010_v53  ;;  %v2032_v41 = vadd.f32 %v2024_v59, %v2022_v6  ;;  %v2087_v32 = vsel %vm2065_vm13, %v2086_v12, %v2082_v38 }
 0x49c   : > { %v2071_v31 = vrot.slane %v2028_v51, %v2070_v11  ;;  %v2091_v22 = vrot.slane %v2032_v41, %v2070_v11 }
 0x49e   : > { %v2073_v8 = vsel %vm2072_vm14, %v2071_v31, %v2066_v48  ;;  %v2092_v7 = vsel %vm2072_vm14, %v2091_v22, %v2087_v32 }
 0x49f   : > { %v2093_v2 = vsel %vm473_vm2, %v2092_v7, %v2073_v8 }
 0x4a0   : > { %v2095_v30 = vadd.f32 %v2093_v2, %v2033_v18  ;;  %v2096_v60 = vadd.f32 %v2093_v2, %v2034_v45  ;;  %v2097_v17 = vadd.f32 %v2093_v2, %v2035_v46  ;;  %v2098_v26 = vadd.f32 %v2093_v2, %v2036_v62 }
 0x4a1   : > { %v2099_v35 = vadd.f32 %v2093_v2, %v2037_v14  ;;  %v2100_v49 = vadd.f32 %v2093_v2, %v2038_v37  ;;  %v2101_v9 = vadd.f32 %v2093_v2, %v2039_v50  ;;  %v2102_v61 = vadd.f32 %v2093_v2, %v2040_v3 }
 0x4a2   : > { %v2304_v47 = vmul.f32 -1.442695, %v2095_v30  ;;  %v2305_v58 = vmul.f32 -1.442695, %v2096_v60  ;;  %v2306_v24 = vmul.f32 -1.442695, %v2097_v17 }
 0x4a3   : > { %v2307_v0 = vmul.f32 -1.442695, %v2098_v26  ;;  %v2308_v39 = vmul.f32 -1.442695, %v2099_v35  ;;  %v2309_v19 = vmul.f32 -1.442695, %v2100_v49 }
 0x4a4   : > { %2438 = vpow2.f32 %v2304_v47  ;;  %v2310_v13 = vmul.f32 -1.442695, %v2101_v9  ;;  %v2311_v27 = vmul.f32 -1.442695, %v2102_v61 }
 0x4a5   : > { %2440 = vpow2.f32 %v2305_v58 }
 0x4a6   : > { %2442 = vpow2.f32 %v2306_v24 }
 0x4a7   : > { %2444 = vpow2.f32 %v2307_v0 }
 0x4a8   : > { %2446 = vpow2.f32 %v2308_v39 }
 0x4a9   : > { %2448 = vpow2.f32 %v2309_v19 }
 0x4aa   : > { %2450 = vpow2.f32 %v2310_v13 }
 0x4ab   : > { %2452 = vpow2.f32 %v2311_v27 }
 0x4ae   : > { %v2439_v16 = vpop.eup %2438 }
 0x4af   : > { %v2441_v23 = vpop.eup %2440  ;;  %v2127_v40 = vadd.f32 1.0, %v2439_v16 }
 0x4b0   : > { %v2443_v56 = vpop.eup %2442  ;;  %v2128_v29 = vadd.f32 1.0, %v2441_v23 }
 0x4b1   : > { %v2445_v42 = vpop.eup %2444  ;;  %v2129_v20 = vadd.f32 1.0, %v2443_v56  ;;  %2454 = vrcp.f32 %v2127_v40 }
 0x4b2   : > { %v2447_v43 = vpop.eup %2446  ;;  %v2130_v44 = vadd.f32 1.0, %v2445_v42  ;;  %2456 = vrcp.f32 %v2128_v29 }
 0x4b3   : > { %v2449_v59 = vpop.eup %2448  ;;  %v2131_v54 = vadd.f32 1.0, %v2447_v43  ;;  %2458 = vrcp.f32 %v2129_v20 }
 0x4b4   : > { %v2451_v57 = vpop.eup %2450  ;;  %v2132_v1 = vadd.f32 1.0, %v2449_v59  ;;  %2460 = vrcp.f32 %v2130_v44 }
 0x4b5   : > { %v2453_v5 = vpop.eup %2452  ;;  %v2133_v15 = vadd.f32 1.0, %v2451_v57  ;;  %2462 = vrcp.f32 %v2131_v54 }
 0x4b6   : > { %v2134_v34 = vadd.f32 1.0, %v2453_v5  ;;  %2464 = vrcp.f32 %v2132_v1 }
 0x4b7   : > { %2466 = vrcp.f32 %v2133_v15 }
 0x4b8   : > { %2468 = vrcp.f32 %v2134_v34 }
 0x4bb   : > { %v2455_v63 = vpop.eup %2454 }
 0x4bc   : > { %v2457_v33 = vpop.eup %2456  ;;  %2151 = vst.msk [vmem:[%s3226_s20] sm:$0x3] %vm425_vm0, %v2455_v63 }
 0x4bd   : > { %v2459_v21 = vpop.eup %2458  ;;  %2152 = vst.msk [vmem:[%s3226_s20 + $0x2] sm:$0x3] %vm425_vm0, %v2457_v33 }
 0x4be   : > { %v2461_v52 = vpop.eup %2460  ;;  %2153 = vst.msk [vmem:[%s3226_s20 + $0x4] sm:$0x3] %vm425_vm0, %v2459_v21 }
 0x4bf   : > { %v2463_v10 = vpop.eup %2462  ;;  %2154 = vst.msk [vmem:[%s3226_s20 + $0x6] sm:$0x3] %vm425_vm0, %v2461_v52 }
 0x4c0   : > { %v2465_v55 = vpop.eup %2464  ;;  %2155 = vst.msk [vmem:[%s3226_s20 + $0x8] sm:$0x3] %vm425_vm0, %v2463_v10 }
 0x4c1   : > { %v2467_v11 = vpop.eup %2466  ;;  %2156 = vst.msk [vmem:[%s3226_s20 + $0xa] sm:$0x3] %vm425_vm0, %v2465_v55 }
 0x4c2   : > { %v2469_v28 = vpop.eup %2468  ;;  %2157 = vst.msk [vmem:[%s3226_s20 + $0xc] sm:$0x3] %vm425_vm0, %v2467_v11 }
 0x4c3   : > { %2158 = vst.msk [vmem:[%s3226_s20 + $0xe] sm:$0x3] %vm425_vm0, %v2469_v28 }
 0x4c4   : > { %2543 = shalt.err (!%p2540_p11)
}
 0x4c5   : > { %s2544_s20 = scalar_lea.hbm %s3676_s17, 256  ;;  %s2548_s16 = scalar_lea.hbm %s3741_s8, 512 }
 0x4c6   : > { %p2545_p1 = scmp.ne.s32.totalorder %s3676_s17, %s2544_s20  ;;  %p2549_p5 = scmp.lt.u32.totalorder %s3676_s17, %s3741_s8 }
 0x4c7   : > { %p2550_p4 = scmp.lt.u32.totalorder %s2548_s16, %s2544_s20  ;;  %p2552_p0 = scmp.lt.u32.totalorder %s2544_s20, %s3676_s17 }
 0x4c8   : > { %p2546_p6 = pnand %p2545_p1, %p3764_p3 }
 0x4c9   : > { %p2551_p8 = por %p2550_p4, %p2549_p5 }
 0x4ca   : > { %p2547_p2 = pneg %p2546_p6 }
 0x4cb   : > { %p2553_p12 = por %p2552_p0, %p2551_p8 }
 0x4cd   : > { %p2554_p13 = pnand %p2553_p12, %p2547_p2 }
 0x4cf   : > { %2557 = shalt.err (!%p2554_p13)
}
 0x4d0   : > { %s2626_s27 = smov 32   ;;  %s2627_s14 = smov 2  }
 0x4d1   : > { %2324 = dma.vmem_to_hbm [thread:$0]  (%p3764_p3), %s3678_s0, 256, %s3676_s17, %s2160_s10, %s2626_s27, %s2626_s27, %s2627_s14  }
 0x4d2 PF: > { %s2188_s15 = sand.u32 1, %s2596_s29   ;;  %p3765_p7 = scmp.ne.s32.totalorder %s3754_s21, 0 }
 0x4d3   : > { %p3766_p10 = scmp.ge.s32.totalorder %s2616_s12, 2  ;;  %s2189_s7 = scalar_lea.sflag [#allocation6], %s2188_s15 }
 0x4d5   : > { %p2334_p9 = pnand %p3766_p10, %p3765_p7 }
 0x4d7   : > { %2591 = dma.done.wait (!%p2334_p9), %s2189_s7, 256  }
 0x4d8   : > { %2593 = vsyncadd (!%p2334_p9), %s2189_s7, 4294967040  ;;  %s28_s12 = sadd.s32 1, %s2616_s12   ;;  %s3767_s28 = sld [smem:[#allocation14_spill]] }
 0x4d9   : > { %p25_p11 = scmp.ge.s32.totalorder %s28_s12, 4   ;;  %s3768_s19 = sld [smem:[#allocation13_spill]] }
 0x4da   : > { %s3769_s29 = smov %s2600_s30  ;;  %s3770_s30 = smov %s2604_s9 }
 0x4db   : > { %s3772_s10 = smov %s2612_s11  ;;  %27 = sbr.rel (!%p25_p11) target bundleno = 11 (0xb), region = 119 }
 0x4de   : > { %s3771_s9 = smov %s3767_s28 }
 0x4df   : > { %s3773_s11 = smov %s3768_s19 }
 0x4e2   :  { %2194 = vsyncpa [#allocation5], 1 }
 0x4e3   :  { %2196 = vsyncpa [#allocation5 + $0x1], 1 }
 0x4e4   :  { %2197 = vsyncpa [#allocation8], 1 }
 0x4e5   :  { %2199 = vsyncpa [#allocation8 + $0x1], 1 }
 0x4e6   :  { %2200 = vsyncpa [#allocation6], 1 }
 0x4e7   :  { %2202 = vsyncpa [#allocation6 + $0x1], 1 }

</bundles_post_ra>
